<compile_context>
chip_gen: v7x
topology: tpu7x:2x2x1
jax: 0.10.0
libtpu: 0.0.40
codegen_flags: <defaults>
</compile_context>

<pallas_src>
import jax
import jax.numpy as jnp
from jax import lax
from jax.experimental import pallas as pl
from jax.experimental.pallas import tpu as pltpu


# ----------------------------- Pallas kernel --------------------------------

def _dense_layer_kernel(x_ref, w1_ref, w2_ref, s1_ref, b1_ref, s2_ref, b2_ref,
                        o_ref, pad_ref, patch_ref):
    # x_ref:  (B, H, W, Cin)       f32      (B = batch tile)
    # w1_ref: (Cin, Cmid)          bf16
    # w2_ref: (9*Cmid, Cout_pad)   bf16     (Cout zero-padded to a multiple of 128)
    # s*/b*:  (1, C)               f32      folded BN scale / shift
    # o_ref:  (B, H, W, Cout_pad)  f32
    # pad_ref   (scratch): (B, H+2, W+2, Cmid) bf16
    # patch_ref (scratch): (B, H, W, 9*Cmid)   bf16
    B, H, W, Cin = x_ref.shape
    Cmid = w1_ref.shape[1]
    Cout_p = o_ref.shape[3]
    M = B * H * W

    # ---- BN1 (folded, f32 on VPU) + ReLU, then 1x1 conv as one MXU matmul ----
    xf = x_ref[...].reshape(M, Cin)
    y1 = jnp.maximum(xf * s1_ref[...] + b1_ref[...], 0.0)
    mid = jnp.dot(y1.astype(jnp.bfloat16), w1_ref[...],
                  preferred_element_type=jnp.float32)            # (M, Cmid) f32

    # ---- BN2 (folded) + ReLU, written into the interior of the pad scratch ----
    y2 = jnp.maximum(mid * s2_ref[...] + b2_ref[...], 0.0)
    pad_ref[:, 1:H + 1, 1:W + 1, :] = y2.reshape(B, H, W, Cmid).astype(pad_ref.dtype)

    # Zero only the 1-pixel border each step (interior is fully overwritten
    # above, so the rest of the buffer never needs re-zeroing).
    zrow = jnp.zeros((B, 1, W + 2, Cmid), pad_ref.dtype)
    zcol = jnp.zeros((B, H, 1, Cmid), pad_ref.dtype)
    pad_ref[:, 0:1, :, :] = zrow
    pad_ref[:, H + 1:H + 2, :, :] = zrow
    pad_ref[:, 1:H + 1, 0:1, :] = zcol
    pad_ref[:, 1:H + 1, W + 1:W + 2, :] = zcol

    # ---- im2col: gather the 9 shifted views into one (B, H, W, 9*Cmid) buffer ----
    for kh in range(3):
        for kw in range(3):
            j = kh * 3 + kw
            patch_ref[:, :, :, j * Cmid:(j + 1) * Cmid] = \
                pad_ref[:, kh:kh + H, kw:kw + W, :]

    # ---- 3x3 conv as ONE matmul: (M, 9*Cmid) x (9*Cmid, Cout_pad) on the MXU ----
    acc = jnp.dot(patch_ref[...].reshape(M, 9 * Cmid), w2_ref[...],
                  preferred_element_type=jnp.float32)
    o_ref[...] = acc.reshape(B, H, W, Cout_p).astype(o_ref.dtype)   # lane-dense store


# ------------------------------ Wrapper --------------------------------------

def dense_layer_forward(inputs, params, drop_rate=0.0, b_tile=1):
    """inputs: NCHW array or list of NCHW arrays (concatenated on channel)."""
    if isinstance(inputs, (list, tuple)):
        x_nchw = jnp.concatenate(inputs, axis=1)
    else:
        x_nchw = inputs
    x = jnp.transpose(x_nchw, (0, 2, 3, 1)).astype(jnp.float32)   # NHWC
    N, H, W, Cin = x.shape

    eps = 1e-5
    s1 = (params["bn1_gamma"] / jnp.sqrt(params["bn1_var"] + eps)).astype(jnp.float32)
    b1 = (params["bn1_beta"] - params["bn1_mean"] * s1).astype(jnp.float32)
    s2 = (params["bn2_gamma"] / jnp.sqrt(params["bn2_var"] + eps)).astype(jnp.float32)
    b2 = (params["bn2_beta"] - params["bn2_mean"] * s2).astype(jnp.float32)

    # 1x1 conv weight: (Cmid, Cin, 1, 1) -> (Cin, Cmid), bf16 MXU operand.
    w1 = jnp.transpose(params["conv1_w"][:, :, 0, 0], (1, 0)).astype(jnp.bfloat16)
    Cmid = w1.shape[1]

    # 3x3 conv weight: (Cout, Cmid, 3, 3) -> (3, 3, Cmid, Cout) -> (9*Cmid, Cout),
    # zero-padded along Cout to a lane-dense multiple of 128.
    w2 = jnp.transpose(params["conv2_w"], (2, 3, 1, 0)).reshape(9 * Cmid, -1)
    Cout = w2.shape[1]
    cout_pad = max(128, ((Cout + 127) // 128) * 128)
    w2 = jnp.pad(w2, ((0, 0), (0, cout_pad - Cout))).astype(jnp.bfloat16)

    if N % b_tile != 0:
        b_tile = 1
    grid = (N // b_tile,)

    out_p = pl.pallas_call(
        _dense_layer_kernel,
        out_shape=jax.ShapeDtypeStruct((N, H, W, cout_pad), jnp.float32),
        grid=grid,
        in_specs=[
            pl.BlockSpec((b_tile, H, W, Cin), lambda n: (n, 0, 0, 0)),
            pl.BlockSpec((Cin, Cmid), lambda n: (0, 0)),
            pl.BlockSpec((9 * Cmid, cout_pad), lambda n: (0, 0)),
            pl.BlockSpec((1, Cin), lambda n: (0, 0)),
            pl.BlockSpec((1, Cin), lambda n: (0, 0)),
            pl.BlockSpec((1, Cmid), lambda n: (0, 0)),
            pl.BlockSpec((1, Cmid), lambda n: (0, 0)),
        ],
        out_specs=pl.BlockSpec((b_tile, H, W, cout_pad), lambda n: (n, 0, 0, 0)),
        scratch_shapes=[
            pltpu.VMEM((b_tile, H + 2, W + 2, Cmid), jnp.bfloat16),
            pltpu.VMEM((b_tile, H, W, 9 * Cmid), jnp.bfloat16),
        ],
        compiler_params=pltpu.CompilerParams(
            dimension_semantics=("parallel",),     # megacore-shardable on v7x
            vmem_limit_bytes=48 * 1024 * 1024,     # fits v7x's 64 MiB physical VMEM
        ),
    )(x, w1, w2, s1.reshape(1, Cin), b1.reshape(1, Cin),
      s2.reshape(1, Cmid), b2.reshape(1, Cmid))

    out = out_p[:, :, :, :Cout]                    # drop Cout padding lanes
    # drop_rate > 0 with training=False is identity (inference mode).
    return jnp.transpose(out, (0, 3, 1, 2))        # back to NCHW


# ---------------------------- Pure-JAX reference ----------------------------

def reference_forward(x_nchw, params, eps=1e-5):
    def bn(x, g, b, m, v):
        inv = g / jnp.sqrt(v + eps)
        return x * inv[None, :, None, None] + (b - m * inv)[None, :, None, None]

    y = jnp.maximum(bn(x_nchw, params["bn1_gamma"], params["bn1_beta"],
                       params["bn1_mean"], params["bn1_var"]), 0.0)
    y = lax.conv_general_dilated(y, params["conv1_w"], (1, 1), "VALID",
                                 dimension_numbers=("NCHW", "OIHW", "NCHW"))
    y = jnp.maximum(bn(y, params["bn2_gamma"], params["bn2_beta"],
                       params["bn2_mean"], params["bn2_var"]), 0.0)
    y = jnp.pad(y, ((0, 0), (0, 0), (1, 1), (1, 1)))
    y = lax.conv_general_dilated(y, params["conv2_w"], (1, 1), "VALID",
                                 dimension_numbers=("NCHW", "OIHW", "NCHW"))
    return y


# --------------------------------- Main --------------------------------------

if __name__ == "__main__":
    key = jax.random.PRNGKey(0)
    num_input_features, growth_rate, bn_size = 16, 8, 4
    drop_rate = 0.0
    N, H, W = 2, 8, 8
    Cmid = bn_size * growth_rate  # 32

    ks = jax.random.split(key, 11)
    x = jax.random.normal(ks[0], (N, num_input_features, H, W), jnp.float32)

    params = {
        "bn1_gamma": jax.random.uniform(ks[1], (num_input_features,), minval=0.5, maxval=1.5),
        "bn1_beta": 0.1 * jax.random.normal(ks[2], (num_input_features,)),
        "bn1_mean": 0.1 * jax.random.normal(ks[3], (num_input_features,)),
        "bn1_var": jax.random.uniform(ks[4], (num_input_features,), minval=0.5, maxval=1.5),
        "conv1_w": 0.1 * jax.random.normal(ks[5], (Cmid, num_input_features, 1, 1)),
        "bn2_gamma": jax.random.uniform(ks[6], (Cmid,), minval=0.5, maxval=1.5),
        "bn2_beta": 0.1 * jax.random.normal(ks[7], (Cmid,)),
        "bn2_mean": 0.1 * jax.random.normal(ks[8], (Cmid,)),
        "bn2_var": jax.random.uniform(ks[9], (Cmid,), minval=0.5, maxval=1.5),
        "conv2_w": 0.1 * jax.random.normal(ks[10], (growth_rate, Cmid, 3, 3)),
    }
    params = {k: v.astype(jnp.float32) for k, v in params.items()}

    out = dense_layer_forward([x], params, drop_rate=drop_rate)
    out = jax.block_until_ready(out)

    ref = jax.block_until_ready(reference_forward(x, params))
    assert out.shape == (N, growth_rate, H, W), out.shape
    # bf16 MXU operands (f32 accumulation) vs. pure-f32 reference -> relaxed tol.
    assert jnp.allclose(out, ref, rtol=3e-2, atol=3e-2), float(jnp.max(jnp.abs(out - ref)))

    print("KERNEL_OK")
</pallas_src>

<mosaic_0001>
module attributes {stable_mosaic.version = 11 : i64} {
  func.func @_dense_layer_kernel(%arg0: i32, %arg1: memref<1x8x8x16xf32, #tpu.memory_space<vmem>>, %arg2: memref<16x32xbf16, #tpu.memory_space<vmem>>, %arg3: memref<288x128xbf16, #tpu.memory_space<vmem>>, %arg4: memref<1x16xf32, #tpu.memory_space<vmem>>, %arg5: memref<1x16xf32, #tpu.memory_space<vmem>>, %arg6: memref<1x32xf32, #tpu.memory_space<vmem>>, %arg7: memref<1x32xf32, #tpu.memory_space<vmem>>, %arg8: memref<1x8x8x128xf32, #tpu.memory_space<vmem>>, %arg9: memref<1x10x10x32xbf16, #tpu.memory_space<vmem>>, %arg10: memref<1x8x8x288xbf16, #tpu.memory_space<vmem>>) attributes {dimension_semantics = [#tpu.dimension_semantics<parallel>], iteration_bounds = array<i64: 2>, scalar_prefetch = 0 : i64, scratch_operands = 2 : i64, tpu.core_type = #tpu.core_type<tc>, window_params = [{transform_indices = @transform_0, window_bounds = array<i64: 1, 8, 8, 16>}, {pipeline_mode = #tpu.pipeline_mode<synchronous>, transform_indices = @transform_1, window_bounds = array<i64: 16, 32>}, {pipeline_mode = #tpu.pipeline_mode<synchronous>, transform_indices = @transform_2, window_bounds = array<i64: 288, 128>}, {pipeline_mode = #tpu.pipeline_mode<synchronous>, transform_indices = @transform_3, window_bounds = array<i64: 1, 16>}, {pipeline_mode = #tpu.pipeline_mode<synchronous>, transform_indices = @transform_4, window_bounds = array<i64: 1, 16>}, {pipeline_mode = #tpu.pipeline_mode<synchronous>, transform_indices = @transform_5, window_bounds = array<i64: 1, 32>}, {pipeline_mode = #tpu.pipeline_mode<synchronous>, transform_indices = @transform_6, window_bounds = array<i64: 1, 32>}, {transform_indices = @transform_7, window_bounds = array<i64: 1, 8, 8, 128>}]} {
    %c0 = arith.constant 0 : index
    %c0_0 = arith.constant 0 : index
    %c0_1 = arith.constant 0 : index
    %c0_2 = arith.constant 0 : index
    %0 = vector.load %arg1[%c0, %c0_0, %c0_1, %c0_2] : memref<1x8x8x16xf32, #tpu.memory_space<vmem>>, vector<1x8x8x16xf32>
    %1 = vector.shape_cast %0 : vector<1x8x8x16xf32> to vector<64x16xf32>
    %c0_3 = arith.constant 0 : index
    %c0_4 = arith.constant 0 : index
    %2 = vector.load %arg4[%c0_3, %c0_4] : memref<1x16xf32, #tpu.memory_space<vmem>>, vector<1x16xf32>
    %3 = vector.broadcast %2 : vector<1x16xf32> to vector<64x16xf32>
    %4 = arith.mulf %1, %3 : vector<64x16xf32>
    %c0_5 = arith.constant 0 : index
    %c0_6 = arith.constant 0 : index
    %5 = vector.load %arg5[%c0_5, %c0_6] : memref<1x16xf32, #tpu.memory_space<vmem>>, vector<1x16xf32>
    %6 = vector.broadcast %5 : vector<1x16xf32> to vector<64x16xf32>
    %7 = arith.addf %4, %6 : vector<64x16xf32>
    %cst = arith.constant 0.000000e+00 : f32
    %8 = vector.broadcast %cst : f32 to vector<64x16xf32>
    %9 = arith.maximumf %7, %8 : vector<64x16xf32>
    %10 = arith.truncf %9 : vector<64x16xf32> to vector<64x16xbf16>
    %c0_7 = arith.constant 0 : index
    %c0_8 = arith.constant 0 : index
    %11 = vector.load %arg2[%c0_7, %c0_8] : memref<16x32xbf16, #tpu.memory_space<vmem>>, vector<16x32xbf16>
    %cst_9 = arith.constant dense<0.000000e+00> : vector<64x32xf32>
    %12 = tpu.matmul %10, %11, %cst_9 {dimension_numbers = #tpu.dot_dimension_numbers<[1], [0], [0], [1], [0, 0, 1, 1], [], []>} : vector<64x16xbf16>, vector<16x32xbf16>, vector<64x32xf32> -> vector<64x32xf32>
    %c0_10 = arith.constant 0 : index
    %c0_11 = arith.constant 0 : index
    %13 = vector.load %arg6[%c0_10, %c0_11] : memref<1x32xf32, #tpu.memory_space<vmem>>, vector<1x32xf32>
    %14 = vector.broadcast %13 : vector<1x32xf32> to vector<64x32xf32>
    %15 = arith.mulf %12, %14 : vector<64x32xf32>
    %c0_12 = arith.constant 0 : index
    %c0_13 = arith.constant 0 : index
    %16 = vector.load %arg7[%c0_12, %c0_13] : memref<1x32xf32, #tpu.memory_space<vmem>>, vector<1x32xf32>
    %17 = vector.broadcast %16 : vector<1x32xf32> to vector<64x32xf32>
    %18 = arith.addf %15, %17 : vector<64x32xf32>
    %cst_14 = arith.constant 0.000000e+00 : f32
    %19 = vector.broadcast %cst_14 : f32 to vector<64x32xf32>
    %20 = arith.maximumf %18, %19 : vector<64x32xf32>
    %21 = vector.shape_cast %20 : vector<64x32xf32> to vector<1x8x8x32xf32>
    %22 = arith.truncf %21 : vector<1x8x8x32xf32> to vector<1x8x8x32xbf16>
    %c0_15 = arith.constant 0 : index
    %c1 = arith.constant 1 : index
    %c1_16 = arith.constant 1 : index
    %c0_17 = arith.constant 0 : index
    %23 = vector.load %arg9[%c0_15, %c1, %c1_16, %c0_17] : memref<1x10x10x32xbf16, #tpu.memory_space<vmem>>, vector<1x8x8x32xbf16>
    tpu.vector_store %arg9[%c0_15, %c1, %c1_16, %c0_17], %22 {strides = array<i32>} : memref<1x10x10x32xbf16, #tpu.memory_space<vmem>>, vector<1x8x8x32xbf16>,
    %cst_18 = arith.constant 0.000000e+00 : bf16
    %24 = vector.broadcast %cst_18 : bf16 to vector<1x1x10x32xbf16>
    %cst_19 = arith.constant 0.000000e+00 : bf16
    %25 = vector.broadcast %cst_19 : bf16 to vector<1x8x1x32xbf16>
    %c0_20 = arith.constant 0 : index
    %c0_21 = arith.constant 0 : index
    %c0_22 = arith.constant 0 : index
    %c0_23 = arith.constant 0 : index
    %26 = vector.load %arg9[%c0_20, %c0_21, %c0_22, %c0_23] : memref<1x10x10x32xbf16, #tpu.memory_space<vmem>>, vector<1x1x10x32xbf16>
    tpu.vector_store %arg9[%c0_20, %c0_21, %c0_22, %c0_23], %24 {strides = array<i32>} : memref<1x10x10x32xbf16, #tpu.memory_space<vmem>>, vector<1x1x10x32xbf16>,
    %c0_24 = arith.constant 0 : index
    %c9 = arith.constant 9 : index
    %c0_25 = arith.constant 0 : index
    %c0_26 = arith.constant 0 : index
    %27 = vector.load %arg9[%c0_24, %c9, %c0_25, %c0_26] : memref<1x10x10x32xbf16, #tpu.memory_space<vmem>>, vector<1x1x10x32xbf16>
    tpu.vector_store %arg9[%c0_24, %c9, %c0_25, %c0_26], %24 {strides = array<i32>} : memref<1x10x10x32xbf16, #tpu.memory_space<vmem>>, vector<1x1x10x32xbf16>,
    %c0_27 = arith.constant 0 : index
    %c1_28 = arith.constant 1 : index
    %c0_29 = arith.constant 0 : index
    %c0_30 = arith.constant 0 : index
    %28 = vector.load %arg9[%c0_27, %c1_28, %c0_29, %c0_30] : memref<1x10x10x32xbf16, #tpu.memory_space<vmem>>, vector<1x8x1x32xbf16>
    tpu.vector_store %arg9[%c0_27, %c1_28, %c0_29, %c0_30], %25 {strides = array<i32>} : memref<1x10x10x32xbf16, #tpu.memory_space<vmem>>, vector<1x8x1x32xbf16>,
    %c0_31 = arith.constant 0 : index
    %c1_32 = arith.constant 1 : index
    %c9_33 = arith.constant 9 : index
    %c0_34 = arith.constant 0 : index
    %29 = vector.load %arg9[%c0_31, %c1_32, %c9_33, %c0_34] : memref<1x10x10x32xbf16, #tpu.memory_space<vmem>>, vector<1x8x1x32xbf16>
    tpu.vector_store %arg9[%c0_31, %c1_32, %c9_33, %c0_34], %25 {strides = array<i32>} : memref<1x10x10x32xbf16, #tpu.memory_space<vmem>>, vector<1x8x1x32xbf16>,
    %c0_35 = arith.constant 0 : index
    %c0_36 = arith.constant 0 : index
    %c0_37 = arith.constant 0 : index
    %c0_38 = arith.constant 0 : index
    %30 = vector.load %arg9[%c0_35, %c0_36, %c0_37, %c0_38] : memref<1x10x10x32xbf16, #tpu.memory_space<vmem>>, vector<1x8x8x32xbf16>
    %c0_39 = arith.constant 0 : index
    %c0_40 = arith.constant 0 : index
    %c0_41 = arith.constant 0 : index
    %c0_42 = arith.constant 0 : index
    %31 = vector.load %arg10[%c0_39, %c0_40, %c0_41, %c0_42] : memref<1x8x8x288xbf16, #tpu.memory_space<vmem>>, vector<1x8x8x32xbf16>
    tpu.vector_store %arg10[%c0_39, %c0_40, %c0_41, %c0_42], %30 {strides = array<i32>} : memref<1x8x8x288xbf16, #tpu.memory_space<vmem>>, vector<1x8x8x32xbf16>,
    %c0_43 = arith.constant 0 : index
    %c0_44 = arith.constant 0 : index
    %c1_45 = arith.constant 1 : index
    %c0_46 = arith.constant 0 : index
    %32 = vector.load %arg9[%c0_43, %c0_44, %c1_45, %c0_46] : memref<1x10x10x32xbf16, #tpu.memory_space<vmem>>, vector<1x8x8x32xbf16>
    %c0_47 = arith.constant 0 : index
    %c0_48 = arith.constant 0 : index
    %c0_49 = arith.constant 0 : index
    %c32 = arith.constant 32 : index
    %33 = vector.load %arg10[%c0_47, %c0_48, %c0_49, %c32] : memref<1x8x8x288xbf16, #tpu.memory_space<vmem>>, vector<1x8x8x32xbf16>
    tpu.vector_store %arg10[%c0_47, %c0_48, %c0_49, %c32], %32 {strides = array<i32>} : memref<1x8x8x288xbf16, #tpu.memory_space<vmem>>, vector<1x8x8x32xbf16>,
    %c0_50 = arith.constant 0 : index
    %c0_51 = arith.constant 0 : index
    %c2 = arith.constant 2 : index
    %c0_52 = arith.constant 0 : index
    %34 = vector.load %arg9[%c0_50, %c0_51, %c2, %c0_52] : memref<1x10x10x32xbf16, #tpu.memory_space<vmem>>, vector<1x8x8x32xbf16>
    %c0_53 = arith.constant 0 : index
    %c0_54 = arith.constant 0 : index
    %c0_55 = arith.constant 0 : index
    %c64 = arith.constant 64 : index
    %35 = vector.load %arg10[%c0_53, %c0_54, %c0_55, %c64] : memref<1x8x8x288xbf16, #tpu.memory_space<vmem>>, vector<1x8x8x32xbf16>
    tpu.vector_store %arg10[%c0_53, %c0_54, %c0_55, %c64], %34 {strides = array<i32>} : memref<1x8x8x288xbf16, #tpu.memory_space<vmem>>, vector<1x8x8x32xbf16>,
    %c0_56 = arith.constant 0 : index
    %c1_57 = arith.constant 1 : index
    %c0_58 = arith.constant 0 : index
    %c0_59 = arith.constant 0 : index
    %36 = vector.load %arg9[%c0_56, %c1_57, %c0_58, %c0_59] : memref<1x10x10x32xbf16, #tpu.memory_space<vmem>>, vector<1x8x8x32xbf16>
    %c0_60 = arith.constant 0 : index
    %c0_61 = arith.constant 0 : index
    %c0_62 = arith.constant 0 : index
    %c96 = arith.constant 96 : index
    %37 = vector.load %arg10[%c0_60, %c0_61, %c0_62, %c96] : memref<1x8x8x288xbf16, #tpu.memory_space<vmem>>, vector<1x8x8x32xbf16>
    tpu.vector_store %arg10[%c0_60, %c0_61, %c0_62, %c96], %36 {strides = array<i32>} : memref<1x8x8x288xbf16, #tpu.memory_space<vmem>>, vector<1x8x8x32xbf16>,
    %c0_63 = arith.constant 0 : index
    %c1_64 = arith.constant 1 : index
    %c1_65 = arith.constant 1 : index
    %c0_66 = arith.constant 0 : index
    %38 = vector.load %arg9[%c0_63, %c1_64, %c1_65, %c0_66] : memref<1x10x10x32xbf16, #tpu.memory_space<vmem>>, vector<1x8x8x32xbf16>
    %c0_67 = arith.constant 0 : index
    %c0_68 = arith.constant 0 : index
    %c0_69 = arith.constant 0 : index
    %c128 = arith.constant 128 : index
    %39 = vector.load %arg10[%c0_67, %c0_68, %c0_69, %c128] : memref<1x8x8x288xbf16, #tpu.memory_space<vmem>>, vector<1x8x8x32xbf16>
    tpu.vector_store %arg10[%c0_67, %c0_68, %c0_69, %c128], %38 {strides = array<i32>} : memref<1x8x8x288xbf16, #tpu.memory_space<vmem>>, vector<1x8x8x32xbf16>,
    %c0_70 = arith.constant 0 : index
    %c1_71 = arith.constant 1 : index
    %c2_72 = arith.constant 2 : index
    %c0_73 = arith.constant 0 : index
    %40 = vector.load %arg9[%c0_70, %c1_71, %c2_72, %c0_73] : memref<1x10x10x32xbf16, #tpu.memory_space<vmem>>, vector<1x8x8x32xbf16>
    %c0_74 = arith.constant 0 : index
    %c0_75 = arith.constant 0 : index
    %c0_76 = arith.constant 0 : index
    %c160 = arith.constant 160 : index
    %41 = vector.load %arg10[%c0_74, %c0_75, %c0_76, %c160] : memref<1x8x8x288xbf16, #tpu.memory_space<vmem>>, vector<1x8x8x32xbf16>
    tpu.vector_store %arg10[%c0_74, %c0_75, %c0_76, %c160], %40 {strides = array<i32>} : memref<1x8x8x288xbf16, #tpu.memory_space<vmem>>, vector<1x8x8x32xbf16>,
    %c0_77 = arith.constant 0 : index
    %c2_78 = arith.constant 2 : index
    %c0_79 = arith.constant 0 : index
    %c0_80 = arith.constant 0 : index
    %42 = vector.load %arg9[%c0_77, %c2_78, %c0_79, %c0_80] : memref<1x10x10x32xbf16, #tpu.memory_space<vmem>>, vector<1x8x8x32xbf16>
    %c0_81 = arith.constant 0 : index
    %c0_82 = arith.constant 0 : index
    %c0_83 = arith.constant 0 : index
    %c192 = arith.constant 192 : index
    %43 = vector.load %arg10[%c0_81, %c0_82, %c0_83, %c192] : memref<1x8x8x288xbf16, #tpu.memory_space<vmem>>, vector<1x8x8x32xbf16>
    tpu.vector_store %arg10[%c0_81, %c0_82, %c0_83, %c192], %42 {strides = array<i32>} : memref<1x8x8x288xbf16, #tpu.memory_space<vmem>>, vector<1x8x8x32xbf16>,
    %c0_84 = arith.constant 0 : index
    %c2_85 = arith.constant 2 : index
    %c1_86 = arith.constant 1 : index
    %c0_87 = arith.constant 0 : index
    %44 = vector.load %arg9[%c0_84, %c2_85, %c1_86, %c0_87] : memref<1x10x10x32xbf16, #tpu.memory_space<vmem>>, vector<1x8x8x32xbf16>
    %c0_88 = arith.constant 0 : index
    %c0_89 = arith.constant 0 : index
    %c0_90 = arith.constant 0 : index
    %c224 = arith.constant 224 : index
    %45 = vector.load %arg10[%c0_88, %c0_89, %c0_90, %c224] : memref<1x8x8x288xbf16, #tpu.memory_space<vmem>>, vector<1x8x8x32xbf16>
    tpu.vector_store %arg10[%c0_88, %c0_89, %c0_90, %c224], %44 {strides = array<i32>} : memref<1x8x8x288xbf16, #tpu.memory_space<vmem>>, vector<1x8x8x32xbf16>,
    %c0_91 = arith.constant 0 : index
    %c2_92 = arith.constant 2 : index
    %c2_93 = arith.constant 2 : index
    %c0_94 = arith.constant 0 : index
    %46 = vector.load %arg9[%c0_91, %c2_92, %c2_93, %c0_94] : memref<1x10x10x32xbf16, #tpu.memory_space<vmem>>, vector<1x8x8x32xbf16>
    %c0_95 = arith.constant 0 : index
    %c0_96 = arith.constant 0 : index
    %c0_97 = arith.constant 0 : index
    %c256 = arith.constant 256 : index
    %47 = vector.load %arg10[%c0_95, %c0_96, %c0_97, %c256] : memref<1x8x8x288xbf16, #tpu.memory_space<vmem>>, vector<1x8x8x32xbf16>
    tpu.vector_store %arg10[%c0_95, %c0_96, %c0_97, %c256], %46 {strides = array<i32>} : memref<1x8x8x288xbf16, #tpu.memory_space<vmem>>, vector<1x8x8x32xbf16>,
    %c0_98 = arith.constant 0 : index
    %c0_99 = arith.constant 0 : index
    %c0_100 = arith.constant 0 : index
    %c0_101 = arith.constant 0 : index
    %48 = vector.load %arg10[%c0_98, %c0_99, %c0_100, %c0_101] : memref<1x8x8x288xbf16, #tpu.memory_space<vmem>>, vector<1x8x8x288xbf16>
    %49 = vector.shape_cast %48 : vector<1x8x8x288xbf16> to vector<64x288xbf16>
    %c0_102 = arith.constant 0 : index
    %c0_103 = arith.constant 0 : index
    %50 = vector.load %arg3[%c0_102, %c0_103] : memref<288x128xbf16, #tpu.memory_space<vmem>>, vector<288x128xbf16>
    %cst_104 = arith.constant dense<0.000000e+00> : vector<64x128xf32>
    %51 = tpu.matmul %49, %50, %cst_104 {dimension_numbers = #tpu.dot_dimension_numbers<[1], [0], [0], [1], [0, 0, 1, 1], [], []>} : vector<64x288xbf16>, vector<288x128xbf16>, vector<64x128xf32> -> vector<64x128xf32>
    %52 = vector.shape_cast %51 : vector<64x128xf32> to vector<1x8x8x128xf32>
    %c0_105 = arith.constant 0 : index
    %c0_106 = arith.constant 0 : index
    %c0_107 = arith.constant 0 : index
    %c0_108 = arith.constant 0 : index
    %53 = vector.load %arg8[%c0_105, %c0_106, %c0_107, %c0_108] : memref<1x8x8x128xf32, #tpu.memory_space<vmem>>, vector<1x8x8x128xf32>
    tpu.vector_store %arg8[%c0_105, %c0_106, %c0_107, %c0_108], %52 {strides = array<i32>} : memref<1x8x8x128xf32, #tpu.memory_space<vmem>>, vector<1x8x8x128xf32>,
    return
  }
  func.func @transform_0(%arg0: i32) -> (i32, i32, i32, i32) {
    %c0_i32 = arith.constant 0 : i32
    %c0_i32_0 = arith.constant 0 : i32
    %c0_i32_1 = arith.constant 0 : i32
    %c0_i32_2 = arith.constant 0 : i32
    return %arg0, %c0_i32, %c0_i32_0, %c0_i32_1 : i32, i32, i32, i32
  }
  func.func @transform_1(%arg0: i32) -> (i32, i32) {
    %c0_i32 = arith.constant 0 : i32
    %c0_i32_0 = arith.constant 0 : i32
    %c0_i32_1 = arith.constant 0 : i32
    return %c0_i32, %c0_i32_0 : i32, i32
  }
  func.func @transform_2(%arg0: i32) -> (i32, i32) {
    %c0_i32 = arith.constant 0 : i32
    %c0_i32_0 = arith.constant 0 : i32
    %c0_i32_1 = arith.constant 0 : i32
    return %c0_i32, %c0_i32_0 : i32, i32
  }
  func.func @transform_3(%arg0: i32) -> (i32, i32) {
    %c0_i32 = arith.constant 0 : i32
    %c0_i32_0 = arith.constant 0 : i32
    %c0_i32_1 = arith.constant 0 : i32
    return %c0_i32, %c0_i32_0 : i32, i32
  }
  func.func @transform_4(%arg0: i32) -> (i32, i32) {
    %c0_i32 = arith.constant 0 : i32
    %c0_i32_0 = arith.constant 0 : i32
    %c0_i32_1 = arith.constant 0 : i32
    return %c0_i32, %c0_i32_0 : i32, i32
  }
  func.func @transform_5(%arg0: i32) -> (i32, i32) {
    %c0_i32 = arith.constant 0 : i32
    %c0_i32_0 = arith.constant 0 : i32
    %c0_i32_1 = arith.constant 0 : i32
    return %c0_i32, %c0_i32_0 : i32, i32
  }
  func.func @transform_6(%arg0: i32) -> (i32, i32) {
    %c0_i32 = arith.constant 0 : i32
    %c0_i32_0 = arith.constant 0 : i32
    %c0_i32_1 = arith.constant 0 : i32
    return %c0_i32, %c0_i32_0 : i32, i32
  }
  func.func @transform_7(%arg0: i32) -> (i32, i32, i32, i32) {
    %c0_i32 = arith.constant 0 : i32
    %c0_i32_0 = arith.constant 0 : i32
    %c0_i32_1 = arith.constant 0 : i32
    %c0_i32_2 = arith.constant 0 : i32
    return %arg0, %c0_i32, %c0_i32_0, %c0_i32_1 : i32, i32, i32, i32
  }
}

</mosaic_0001>

<bundles_post_ra>
// kernel: tpu_custom_call.1
= control target key start
LH: loop header
LB: loop body
LE: loop exit
PB: predicated region body
PF: predicated region fallthrough
CT: control target
= control target key end

     0   :  { %12 = vsyncpa [#allocation5], 0  ;;  %s3298_s0 = inlined_call_operand.hbm [shape: f32[2,8,8,16], index: 0, kind: input, shape index: {}]   ;;  %s3299_s1 = inlined_call_operand.hbm [shape: bf16[16,32], index: 1, kind: input, shape index: {}]   ;;  %s3300_s2 = inlined_call_operand.hbm [shape: bf16[288,128], index: 2, kind: input, shape index: {}]   ;;  %s3301_s3 = inlined_call_operand.vmem [shape: f32[1,16], index: 3, kind: input, shape index: {}]   ;;  %s3302_s4 = inlined_call_operand.vmem [shape: f32[1,16], index: 4, kind: input, shape index: {}]   ;;  %s3303_s5 = inlined_call_operand.vmem [shape: f32[1,32], index: 5, kind: input, shape index: {}]   ;;  %s3304_s6 = inlined_call_operand.vmem [shape: f32[1,32], index: 6, kind: input, shape index: {}]   ;;  %s3305_s7 = inlined_call_operand.hbm [shape: f32[2,8,8,128], index: 7, kind: output, shape index: {}]  }
   0x1   :  { %14 = vsyncpa [#allocation5 + $0x1], 0 }
   0x2   :  { %15 = vsyncpa [#allocation8], 0 }
   0x3   :  { %16 = vsyncpa [#allocation6], 0 }
   0x4   :  { %18 = vsyncpa [#allocation6 + $0x1], 0  ;;  %s2559_s24 = smov 0   ;;  %s2561_s25 = smov 0  }
   0x5   :  { %s2563_s26 = smov 0   ;;  %s2565_s27 = smov 0  }
   0x6 LB: > { %s2580_s28 = sadd.s32 4294967295, %s2503_s27   ;;  %s2059_s29 = sadd.s32 4294967294, %s2503_s27   ;;  %s2503_s27 = sphi %s2565_s27, %s3335_s27   ;;  %s2499_s26 = sphi %s2563_s26, %s3334_s26   ;;  %s2495_s25 = sphi %s2561_s25, %s3333_s25   ;;  %s2491_s24 = sphi %s2559_s24, %s3332_s24  }
   0x7   : > { %p44_p0 = scmp.ne.s32.totalorder %s2495_s25, %s2491_s24  ;;  %p3306_p1 = scmp.eq.s32.totalorder %s2580_s28, 0 }
   0x8   : > { %p200_p3 = scmp.eq.s32.totalorder %s2059_s29, 1  ;;  %p2060_p5 = scmp.ge.s32.totalorder %s2503_s27, 1 }
   0x9   : > { %p2589_p4 = por %p3306_p1, %p44_p0  ;;  %p207_p7 = scmp.lt.s32.totalorder %s2503_s27, 3 }
   0xa   : > { %p2594_p6 = por %p200_p3, %p44_p0  ;;  %s2505_s10 = smov [#allocation7]  }
   0xb   : > { %s3309_s30 = scalar_select %p2589_p4, 1, 0 }
   0xc   : > { %s3310_s8 = scalar_select %p2594_p6, 1, 0 }
   0xd   : > { %p2599_p8 = pnand %p2060_p5, %p207_p7  ;;  %s219_s11 = sshll.u32 %s2505_s10, 4  ;;  %s2603_s11 = int_to_ptr.vmem [resolvable:$true] %s219_s11 }
   0xe   : > { %s2506_s13 = smov [#allocation9]   ;;  %s2347_s17 = scalar_lea.hbm %s3299_s1, 128 }
   0xf   : > { %p2247_p9 = pneg %p2599_p8  ;;  %s232_s14 = sshll.u32 %s2506_s13, 4  ;;  %s2614_s14 = int_to_ptr.vmem [resolvable:$true] %s232_s14 }
  0x10   : > { %p2348_p12 = scmp.ne.s32.totalorder %s3299_s1, %s2347_s17  ;;  %p2354_p5 = scmp.lt.u32.totalorder %s2347_s17, %s3299_s1 }
  0x11   : > { %p2610_p11 = pnand %p2247_p9, %p3306_p1 }
  0x13   : > { %p2349_p13 = pneg %p2610_p11 }
  0x15   : > { %p2350_p0 = pnand %p2349_p13, %p2348_p12 }
  0x17   : > { %p2351_p3 = pneg %p2350_p0 }
  0x19   : > { %p2356_p7 = pnand %p2354_p5, %p2351_p3 }
  0x1b   : > { %2359 = shalt.err (!%p2356_p7)
}
  0x1c   : > { %s2360_s22 = scalar_lea.vmem %s2603_s11, 128  ;;  %p2368_p2 = scmp.lt.s32.totalorder %s2603_s11, %s2603_s11 }
  0x1d   : > { %p2361_p9 = scmp.ne.s32.totalorder %s2603_s11, %s2360_s22  ;;  %p2369_p12 = scmp.lt.s32.totalorder %s2360_s22, %s2360_s22 }
  0x1f   : > { %p2363_p10 = pnand %p2361_p9, %p2349_p13  ;;  %p2370_p0 = por %p2369_p12, %p2368_p2 }
  0x21   : > { %p2364_p1 = pneg %p2363_p10 }
  0x23   : > { %p2371_p6 = pnand %p2370_p0, %p2364_p1 }
  0x25   : > { %2374 = shalt.err (!%p2371_p6)
}
  0x26   : > { %s2507_s23 = smov 64   ;;  %s2508_s29 = smov 4  }
  0x27   : > { %2250 = dma.hbm_to_vmem [thread:$0]  (!%p2610_p11), %s3299_s1, 128, %s2603_s11, [#allocation8], %s2507_s23, %s2507_s23, %s2508_s29  }
  0x28   : > { %s2375_s17 = scalar_lea.hbm %s3300_s2, 2304 }
  0x29   : > { %p2376_p2 = scmp.ne.s32.totalorder %s3300_s2, %s2375_s17  ;;  %p2382_p10 = scmp.lt.u32.totalorder %s2375_s17, %s3300_s2 }
  0x2b   : > { %p2378_p1 = pnand %p2376_p2, %p2349_p13 }
  0x2d   : > { %p2379_p6 = pneg %p2378_p1 }
  0x2f   : > { %p2384_p3 = pnand %p2382_p10, %p2379_p6 }
  0x31   : > { %2387 = shalt.err (!%p2384_p3)
}
  0x32   : > { %s2388_s11 = scalar_lea.vmem %s2614_s14, 2304  ;;  %p2396_p12 = scmp.lt.s32.totalorder %s2614_s14, %s2614_s14 }
  0x33   : > { %p2389_p5 = scmp.ne.s32.totalorder %s2614_s14, %s2388_s11  ;;  %p2397_p0 = scmp.lt.s32.totalorder %s2388_s11, %s2388_s11 }
  0x35   : > { %p2391_p7 = pnand %p2389_p5, %p2349_p13  ;;  %p2398_p2 = por %p2397_p0, %p2396_p12 }
  0x37   : > { %p2392_p9 = pneg %p2391_p7 }
  0x39   : > { %p2399_p1 = pnand %p2398_p2, %p2392_p9 }
  0x3b   : > { %2402 = shalt.err (!%p2399_p1)
}
  0x3c   : > { %2253 = dma.hbm_to_vmem [thread:$0]  (!%p2610_p11), %s3300_s2, 2304, %s2614_s14, [#allocation8], %s2507_s23, %s2507_s23, %s2508_s29  }
  0x3d   : > { %s2669_s13 = sadd.s32 1, %s2503_s27   ;;  %s31_s12 = sadd.s32 1, %s2499_s26 }
  0x3e   : > { %s28_s15 = ssub.s32 %s2503_s27, %s2669_s13  ;;  %p38_p13 = scmp.ne.s32.totalorder %s2499_s26, %s2495_s25 }
  0x3f   : > { %p29_p6 = scmp.eq.s32.totalorder %s28_s15, 0  ;;  %p39_p10 = scmp.eq.s32.totalorder %s2503_s27, 0 }
  0x40   : > { %p3313_p3 = scmp.eq.s32.totalorder %s2580_s28, 1  ;;  %p2264_p7 = scmp.lt.s32.totalorder %s2503_s27, 2 }
  0x41   : > { %s2685_s17 = scalar_select %p29_p6, %s2499_s26, %s31_s12  }
  0x42   : > { %p2679_p5 = por %p3313_p3, %p38_p13  ;;  %p40_p9 = por %p39_p10, %p38_p13 }
  0x43   : > { %s258_s18 = sand.u32 1, %s2499_s26   ;;  %s2152_s14 = sshll.u32 %s2503_s27, 10 }
  0x44   : > { %s3314_s16 = scalar_select %p2679_p5, 1, 0 }
  0x45   : > { %s2064_s19 = sshll.u32 %s258_s18, 6  ;;  %s2692_s20 = scalar_lea.hbm %s3298_s0, %s2152_s14 }
  0x46   : > { %s262_s21 = scalar_lea.vmem [#allocation4], %s2064_s19  ;;  %p2696_p11 = pnand %p2264_p7, %p40_p9 }
  0x47   : > { %s269_s11 = sshll.u32 %s262_s21, 4  ;;  %s2700_s10 = scalar_lea.sflag [#allocation5], %s258_s18  ;;  %s2694_s11 = int_to_ptr.vmem [resolvable:$true] %s269_s11 }
  0x48   : > { %s2403_s12 = scalar_lea.hbm %s2692_s20, 1024  ;;  %p2405_p0 = pneg %p2696_p11 }
  0x49   : > { %p2404_p12 = scmp.ne.s32.totalorder %s2692_s20, %s2403_s12  ;;  %s2408_s14 = scalar_lea.hbm %s3298_s0, 2048 }
  0x4a   : > { %p2409_p13 = scmp.lt.u32.totalorder %s2692_s20, %s3298_s0  ;;  %p2410_p6 = scmp.lt.u32.totalorder %s2408_s14, %s2403_s12 }
  0x4b   : > { %p2406_p2 = pnand %p2405_p0, %p2404_p12  ;;  %p2412_p3 = scmp.lt.u32.totalorder %s2403_s12, %s2692_s20 }
  0x4c   : > { %p2411_p10 = por %p2410_p6, %p2409_p13 }
  0x4d   : > { %p2407_p1 = pneg %p2406_p2 }
  0x4e   : > { %p2413_p7 = por %p2412_p3, %p2411_p10 }
  0x50   : > { %p2414_p9 = pnand %p2413_p7, %p2407_p1 }
  0x52   : > { %2417 = shalt.err (!%p2414_p9)
}
  0x53   : > { %s2418_s18 = scalar_lea.vmem %s2694_s11, 1024  ;;  %s2509_s21 = smov [#allocation4]  }
  0x54   : > { %p2419_p12 = scmp.ne.s32.totalorder %s2694_s11, %s2418_s18  ;;  %s2423_s15 = sshll.u32 %s2509_s21, 4  ;;  %s2424_s15 = int_to_ptr.vmem [resolvable:$false] %s2423_s15 }
  0x55   : > { %s2425_s19 = scalar_lea.vmem %s2424_s15, 2048  ;;  %p2426_p4 = scmp.lt.s32.totalorder %s2694_s11, %s2424_s15 }
  0x56   : > { %p2421_p2 = pnand %p2419_p12, %p2405_p0  ;;  %p2427_p13 = scmp.lt.s32.totalorder %s2425_s19, %s2418_s18 }
  0x58   : > { %p2422_p5 = pneg %p2421_p2  ;;  %p2428_p6 = por %p2427_p13, %p2426_p4 }
  0x5a   : > { %p2429_p10 = pnand %p2428_p6, %p2422_p5 }
  0x5c   : > { %2432 = shalt.err (!%p2429_p10)
}
  0x5d   : > { %s2510_s12 = smov 128   ;;  %s2511_s14 = smov 8  }
  0x5e   : > { %2257 = dma.hbm_to_vmem [thread:$0]  (!%p2696_p11), %s2692_s20, 1024, %s2694_s11, %s2700_s10, %s2510_s12, %s2510_s12, %s2511_s14  }
  0x5f   : > { %281 = sbr.rel (%p2599_p8) target bundleno = 818 (0x332), region = 48  ;;  %s2731_s23 = sand.u32 (!%p2599_p8), 1, %s2495_s25  }
  0x60   : > { %s2068_s29 = sshll.u32 (!%p2599_p8), %s2731_s23, 6  ;;  %s284_s18 = scalar_lea.sflag (!%p2599_p8), [#allocation5], %s2731_s23 }
  0x61   : > { %s287_s21 = scalar_lea.vmem (!%p2599_p8), [#allocation4], %s2068_s29  ;;  %p3316_p4 = scmp.ne.s32.totalorder (!%p2599_p8), %s3309_s30, 0 }
  0x66   : > { %2478 = dma.done.wait (%p3316_p4), %s284_s18, 1024  }
  0x67   : > { %2480 = vsyncadd (%p3316_p4), %s284_s18, 4294966272  ;;  %p3317_p5 = scmp.eq.s32.totalorder %s2580_s28, 0 }
  0x69   : > { %2482 = dma.done.wait (%p3317_p5), [#allocation8], 2432   ;;  %p3318_p8 = pmov %p3317_p5 }
  0x6a   : > { %v2312_v0 = vld [vmem:[#allocation7] sm:$0xff]   ;;  %v328_v2 = vld [vmem:[%s287_s21 + $0x8] sm:$0xff]  ;;  %v2072_v3 = vld [vmem:[%s3301_s3] ss:$0 sm:$0xff]  ;;  %vm385_vm0 = vcmask 130048   ;;  %vm614_vm1 = vcmask 257024  }
  0x6b   : > { %2484 = vsyncadd (%p3318_p8), [#allocation8], 4294964864  ;;  %v327_v1 = vld [vmem:[%s287_s21] sm:$0xff]  ;;  %2213 = vmatprep.subr.bf16.mxu0 %v2312_v0  ;;  %v343_v5 = vmul.f32 %v2072_v3, %v328_v2  ;;  %v2073_v6 = vld [vmem:[%s3302_s4] ss:$0 sm:$0xff]  ;;  %v2512_v39 = vmov 0  }
  0x6c   : > { %v342_v4 = vmul.f32 %v2072_v3, %v327_v1  ;;  %v329_v7 = vld [vmem:[%s287_s21 + $0x10] sm:$0xff]  ;;  %v330_v8 = vld [vmem:[%s287_s21 + $0x18] sm:$0xff]  ;;  %2214 = vmatpush3.bf16.msra.mxu0 %v2312_v0  ;;  %v331_v11 = vld [vmem:[%s287_s21 + $0x20] sm:$0xff]  ;;  %673 = vst.msk [vmem:[#allocation2 + $0x48] sm:$0xf] %vm614_vm1, %v2512_v39  ;;  %vm620_vm2 = vcmask 253952  }
  0x6d   : > { %v344_v9 = vmul.f32 %v2072_v3, %v329_v7  ;;  %v345_v10 = vmul.f32 %v2072_v3, %v330_v8  ;;  %v332_v12 = vld [vmem:[%s287_s21 + $0x28] sm:$0xff]  ;;  %v333_v13 = vld [vmem:[%s287_s21 + $0x30] sm:$0xff]  ;;  %v358_v15 = vadd.f32 %v2073_v6, %v343_v5  ;;  %v346_v16 = vmul.f32 %v2072_v3, %v331_v11  ;;  %v334_v18 = vld [vmem:[%s287_s21 + $0x38] sm:$0xff]  ;;  %669 = vst.msk [vmem:[#allocation2] sm:$0xf] %vm614_vm1, %v2512_v39  ;;  %s2513_s30 = smov 64  }
  0x6e   : > { %v357_v14 = vadd.f32 %v2073_v6, %v342_v4  ;;  %v347_v17 = vmul.f32 %v2072_v3, %v332_v12  ;;  %v348_v21 = vmul.f32 %v2072_v3, %v333_v13  ;;  %v349_v22 = vmul.f32 %v2072_v3, %v334_v18  ;;  %674 = vst.msk [vmem:[#allocation2 + $0x4c] sm:$0x1] %vm620_vm2, %v2512_v39  ;;  %s2514_s10 = smov 32   ;;  %v2313_v58 = vld [vmem:[#allocation9 + $0x80] sm:$0xff]   ;;  %v2315_v59 = vld [vmem:[#allocation9 + $0x88] sm:$0xff]   ;;  %s2515_s18 = smov 96  }
  0x6f   : > { %v359_v19 = vadd.f32 %v2073_v6, %v344_v9  ;;  %v360_v20 = vadd.f32 %v2073_v6, %v345_v10  ;;  %v366_v24 = vmax.f32 %v358_v15, 0.0  ;;  %v361_v25 = vadd.f32 %v2073_v6, %v346_v16  ;;  %671 = vst.msk [vmem:[#allocation2 + $0x4] sm:$0x1] %vm620_vm2, %v2512_v39  ;;  %2223 = vmatprep.subr.bf16.mxu0 %v2313_v58  ;;  %v2779_v1 = vld [vmem:[%s3303_s5] ss:$0 sm:$0xff]  ;;  %s3237_s21 = scalar_lea.vmem [#allocation10], %s2068_s29 }
  0x70   : > { %v365_v23 = vmax.f32 %v357_v14, 0.0  ;;  %v362_v26 = vadd.f32 %v2073_v6, %v347_v17  ;;  %v363_v29 = vadd.f32 %v2073_v6, %v348_v21  ;;  %v364_v30 = vadd.f32 %v2073_v6, %v349_v22  ;;  %v2785_v4 = vld [vmem:[%s3304_s6] ss:$0 sm:$0xff]  ;;  %s1967_s29 = sshll.u32 %s3237_s21, 4  ;;  %s2161_s9 = sshll.u32 %s2580_s28, 10  ;;  %s3247_s29 = int_to_ptr.vmem [resolvable:$true] %s1967_s29 }
  0x71   : > { %v367_v27 = vmax.f32 %v359_v19, 0.0  ;;  %v368_v28 = vmax.f32 %v360_v20, 0.0  ;;  %v369_v32 = vmax.f32 %v361_v25, 0.0  ;;  %vm936_vm3 = vcmask 1042432   ;;  %s3252_s22 = scalar_lea.hbm %s3305_s7, %s2161_s9  ;;  %p3329_p0 = scmp.ne.s32.totalorder %s3314_s16, 0 }
  0x72   : > { %v373_v31 = vpack.c.bf16 %v366_v24, %v365_v23  ;;  %v370_v33 = vmax.f32 %v362_v26, 0.0  ;;  %v371_v35 = vmax.f32 %v363_v29, 0.0  ;;  %v372_v36 = vmax.f32 %v364_v30, 0.0  ;;  %v635_v29 = vld [vmem:[#allocation2 + $0x1c] sm:$0x1]  ;;  %s2516_s28 = smov [#allocation10]  }
  0x73   : > { %v374_v34 = vpack.c.bf16 %v368_v28, %v367_v27  ;;  %vm937_vm4 = vcmask 1046532   ;;  %vm756_vm6 = vsmask.f32 3328  ;;  %vm757_vm7 = vsmask.f32 7440  ;;  %s2437_s15 = sshll.u32 %s2516_s28, 4  ;;  %s2438_s15 = int_to_ptr.vmem [resolvable:$false] %s2437_s15 }
  0x74   : > { %2215 = vmatprep.mubr.msk.bf16.mxu0 %vm385_vm0, %v373_v31  ;;  %v375_v37 = vpack.c.bf16 %v370_v33, %v369_v32  ;;  %v376_v38 = vpack.c.bf16 %v372_v36, %v371_v35  ;;  %v740_v40 = vld [vmem:[#allocation2] sm:$0xf]  ;;  %vm2759_vm5 = vmor %vm936_vm3, %vm937_vm4  ;;  %v1516_v60 = vld [vmem:[#allocation2 + $0x48] sm:$0xe]  ;;  %vm615_vm9 = vsmask.f32 7938  ;;  %p2440_p7 = scmp.lt.s32.totalorder %s3247_s29, %s2438_s15 }
  0x75   : > { %2216 = vmatmul.mubr.msk.bf16.vlgmr.msra.gmra.mrb[0].mxu0 %vm385_vm0, %v374_v34  ;;  %v760_v41 = vshrl.u32 %v740_v40, 16  ;;  %v763_v42 = vshll.u32 %v740_v40, 16  ;;  %v904_v44 = vld [vmem:[#allocation2] sm:$0xe]  ;;  %vm2766_vm8 = vmor %vm756_vm6, %vm757_vm7  ;;  %v1517_v61 = vld [vmem:[#allocation2 + $0x4c] sm:$0x1] }
  0x76   : > { %2219 = vmatprep.mubr.msk.bf16.mxu0 %vm385_vm0, %v375_v37  ;;  %v905_v45 = vld [vmem:[#allocation2 + $0x4] sm:$0x1]  ;;  %v2089_v46 = vrot.slane %v904_v44, 9  ;;  %2224 = vmatpush3.bf16.msra.mxu0 %v2313_v58  ;;  %v2112_v62 = vrot.slane %v1516_v60, 9  ;;  %v1564_v63 = vrot.slane %v1517_v61, 5  ;;  %vm895_vm11 = vcmask 519424   ;;  %vm2799_vm12 = vmand %vm614_vm1, %vm615_vm9 }
  0x77   : > { %v941_v47 = vrot.slane %v905_v45, 5  ;;  %v762_v48 = vrot.slane %v760_v41, 4  ;;  %v765_v49 = vrot.slane %v763_v42, 5  ;;  %v741_v50 = vld [vmem:[#allocation2 + $0x4] sm:$0x1]  ;;  %2225 = vmatprep.subr.bf16.mxu0 %v2315_v59  ;;  %vm995_vm14 = vcmask 781824   ;;  %vm2833_vm15 = vmand %vm620_vm2, %vm615_vm9 }
  0x78   : > { %v769_v53 = vshll.u32 %v741_v50, 16  ;;  %v1565_v0 = vsel %vm2759_vm5, %v2112_v62, %v1564_v63  ;;  %v724_v2 = vld [vmem:[#allocation2] sm:$0xf]  ;;  %vm621_vm10 = vsmask.f32 256  ;;  %s2439_s19 = scalar_lea.vmem %s2438_s15, 2048 }
  0x79   : > { %v942_v51 = vsel %vm2759_vm5, %v2089_v46, %v941_v47  ;;  %v766_v52 = vor.u32 %v765_v49, %v762_v48  ;;  %1581 = vst.msk [vmem:[#allocation3 + $0x5c] sm:$0xf] %vm614_vm1, %v1565_v0  ;;  %732 = vst.msk [vmem:[#allocation3] sm:$0xf] %vm614_vm1, %v724_v2  ;;  %v632_v28 = vld [vmem:[#allocation2 + $0x18] sm:$0xf] }
  0x7a   : > { %971 = vrot.lane.b32.xlu0 %v942_v51, %s2513_s30  ;;  %v771_v55 = vrot.slane %v769_v53, 5  ;;  %2226 = vmatpush3.bf16.msra.mxu0 %v2315_v59  ;;  %v617_v37 = vld [vmem:[#allocation2 + $0x8] sm:$0xf]  ;;  %vm2806_vm13 = vmand %vm620_vm2, %vm621_vm10  ;;  %v623_v45 = vld [vmem:[#allocation2 + $0xc] sm:$0x1]  ;;  %vm1044_vm2 = vcmask 1044224  }
  0x7b   : > { %v767_v54 = vrot.slane %v766_v52, 4  ;;  %v638_v52 = vld [vmem:[#allocation2 + $0x20] sm:$0xf]  ;;  %v626_v0 = vld [vmem:[#allocation2 + $0x10] sm:$0xf] }
  0x7c   : > { %v629_v2 = vld [vmem:[#allocation2 + $0x14] sm:$0x1] }
  0x7d   : > { %2220 = vmatmul.mubr.msk.bf16.gmra.mrb[4].mxu0 %vm385_vm0, %v376_v38  ;;  %v772_v57 = vsel %vm2766_vm8, %v767_v54, %v771_v55  ;;  %vm1802_vm0 = vcmask 261120  }
  0x7e   : > { %871 = vrot.lane.b32.xlu0 %v772_v57, %s2514_s10  ;;  %v641_v57 = vld [vmem:[#allocation2 + $0x24] sm:$0x1] }
 0x148   : > { %v2217_v3 = vpop.f32.mrb[0].mxu0 }
 0x149   : > { %v472_v5 = vmul.f32 %v2217_v3, %v2779_v1  ;;  %v432_v6 = vpop.f32.mrb[1].mxu0 }
 0x14a   : > { %v470_v7 = vmul.f32 %v2779_v1, %v432_v6  ;;  %v2218_v8 = vpop.f32.mrb[2].mxu0 }
 0x14b   : > { %v487_v9 = vadd.f32 %v2785_v4, %v472_v5  ;;  %v473_v10 = vmul.f32 %v2218_v8, %v2779_v1  ;;  %v435_v11 = vpop.f32.mrb[3].mxu0  ;;  %v972_v8 = vpop.permute.xlu0 %971 }
 0x14c   : > { %v485_v12 = vadd.f32 %v2785_v4, %v470_v7  ;;  %v471_v13 = vmul.f32 %v2779_v1, %v435_v11 }
 0x14d   : > { %v495_v14 = vmax.f32 %v487_v9, 0.0  ;;  %v488_v15 = vadd.f32 %v2785_v4, %v473_v10 }
 0x14e   : > { %v493_v16 = vmax.f32 %v485_v12, 0.0  ;;  %v486_v17 = vadd.f32 %v2785_v4, %v471_v13 }
 0x14f   : > { %v2155_v18 = vpack.c.bf16 %v495_v14, %v495_v14  ;;  %v496_v19 = vmax.f32 %v488_v15, 0.0 }
 0x150   : > { %v2153_v20 = vpack.c.bf16 %v493_v16, %v493_v16  ;;  %v494_v21 = vmax.f32 %v486_v17, 0.0  ;;  %v2221_v22 = vpop.f32.mrb[4].mxu0 }
 0x151   : > { %v550_v23 = vshrl.u32 %v2155_v18, 16  ;;  %v553_v24 = vshll.u32 %v2155_v18, 16  ;;  %v2156_v25 = vpack.c.bf16 %v496_v19, %v496_v19  ;;  %v476_v26 = vmul.f32 %v2221_v22, %v2779_v1  ;;  %v448_v27 = vpop.f32.mrb[5].mxu0 }
 0x152   : > { %v534_v30 = vshrl.u32 %v2153_v20, 16  ;;  %v537_v31 = vshll.u32 %v2153_v20, 16  ;;  %v2154_v32 = vpack.c.bf16 %v494_v21, %v494_v21  ;;  %v474_v33 = vmul.f32 %v2779_v1, %v448_v27  ;;  %v2222_v34 = vpop.f32.mrb[6].mxu0  ;;  %v656_v27 = vld [vmem:[#allocation2 + $0x38] sm:$0xf] }
 0x153   : > { %v552_v35 = vrot.slane %v550_v23, 7  ;;  %v558_v38 = vshrl.u32 %v2156_v25, 16  ;;  %v561_v39 = vshll.u32 %v2156_v25, 16  ;;  %v491_v40 = vadd.f32 %v2785_v4, %v476_v26  ;;  %v451_v41 = vpop.f32.mrb[7].mxu0  ;;  %v872_v23 = vpop.permute.xlu0 %871 }
 0x154   : > { %v536_v44 = vrot.slane %v534_v30, 7  ;;  %v542_v46 = vshrl.u32 %v2154_v32, 16  ;;  %v545_v47 = vshll.u32 %v2154_v32, 16  ;;  %v489_v48 = vadd.f32 %v2785_v4, %v474_v33  ;;  %896 = vst.msk [vmem:[#allocation3] sm:$0xf] %vm895_vm11, %v872_v23 }
 0x155   : > { %v555_v49 = vor.u32 %v553_v24, %v552_v35  ;;  %v556_v50 = vrot.slane %v552_v35, 4  ;;  %v560_v51 = vrot.slane %v558_v38, 7  ;;  %v499_v53 = vmax.f32 %v491_v40, 0.0  ;;  %996 = vst.msk [vmem:[#allocation3] sm:$0xf] %vm995_vm14, %v972_v8 }
 0x156   : > { %v539_v54 = vor.u32 %v537_v31, %v536_v44  ;;  %v540_v55 = vrot.slane %v536_v44, 4  ;;  %v544_v58 = vrot.slane %v542_v46, 7  ;;  %v497_v59 = vmax.f32 %v489_v48, 0.0  ;;  %v650_v8 = vld [vmem:[#allocation2 + $0x30] sm:$0xf] }
 0x157   : > { %v633_v60 = vsel %vm2799_vm12, %v555_v49, %v632_v28  ;;  %v636_v61 = vsel %vm2806_vm13, %v556_v50, %v635_v29  ;;  %v563_v62 = vor.u32 %v561_v39, %v560_v51  ;;  %v564_v63 = vrot.slane %v560_v51, 4  ;;  %v644_v28 = vld [vmem:[#allocation2 + $0x28] sm:$0xf]  ;;  %v647_v29 = vld [vmem:[#allocation2 + $0x2c] sm:$0x1] }
 0x158   : > { %634 = vst [vmem:[#allocation2 + $0x18] sm:$0xf] %v633_v60  ;;  %637 = vst [vmem:[#allocation2 + $0x1c] sm:$0x1] %v636_v61  ;;  %v618_v3 = vsel %vm2799_vm12, %v539_v54, %v617_v37  ;;  %v624_v5 = vsel %vm2806_vm13, %v540_v55, %v623_v45  ;;  %v547_v6 = vor.u32 %v545_v47, %v544_v58  ;;  %v548_v7 = vrot.slane %v544_v58, 4 }
 0x159   : > { %619 = vst [vmem:[#allocation2 + $0x8] sm:$0xf] %v618_v3  ;;  %625 = vst [vmem:[#allocation2 + $0xc] sm:$0x1] %v624_v5  ;;  %v639_v9 = vsel %vm2799_vm12, %v563_v62, %v638_v52  ;;  %v642_v10 = vsel %vm2806_vm13, %v564_v63, %v641_v57  ;;  %v2159_v11 = vpack.c.bf16 %v499_v53, %v499_v53  ;;  %v662_v3 = vld [vmem:[#allocation2 + $0x40] sm:$0xf] }
 0x15a   : > { %v2157_v12 = vpack.c.bf16 %v497_v59, %v497_v59  ;;  %640 = vst [vmem:[#allocation2 + $0x20] sm:$0xf] %v639_v9  ;;  %643 = vst [vmem:[#allocation2 + $0x24] sm:$0x1] %v642_v10  ;;  %v627_v13 = vsel %vm2799_vm12, %v547_v6, %v626_v0  ;;  %v630_v14 = vsel %vm2806_vm13, %v548_v7, %v629_v2  ;;  %v665_v5 = vld [vmem:[#allocation2 + $0x44] sm:$0x1] }
 0x15b   : > { %v477_v15 = vmul.f32 %v2222_v34, %v2779_v1  ;;  %v475_v16 = vmul.f32 %v2779_v1, %v451_v41  ;;  %628 = vst [vmem:[#allocation2 + $0x10] sm:$0xf] %v627_v13  ;;  %631 = vst [vmem:[#allocation2 + $0x14] sm:$0x1] %v630_v14  ;;  %v582_v17 = vshrl.u32 %v2159_v11, 16  ;;  %v585_v18 = vshll.u32 %v2159_v11, 16 }
 0x15c   : > { %v566_v19 = vshrl.u32 %v2157_v12, 16  ;;  %v569_v20 = vshll.u32 %v2157_v12, 16  ;;  %v659_v1 = vld [vmem:[#allocation2 + $0x3c] sm:$0x1]  ;;  %v653_v11 = vld [vmem:[#allocation2 + $0x34] sm:$0x1] }
 0x15d   : > { %v492_v21 = vadd.f32 %v2785_v4, %v477_v15  ;;  %v490_v22 = vadd.f32 %v2785_v4, %v475_v16  ;;  %v584_v25 = vrot.slane %v582_v17, 7  ;;  %v2865_v17 = vld [vmem:[#allocation2 + $0x48] sm:$0xf] }
 0x15e   : > { %v568_v26 = vrot.slane %v566_v19, 7  ;;  %v1457_v36 = vshrl.u32 %v2865_v17, 16 }
 0x15f   : > { %v500_v30 = vmax.f32 %v492_v21, 0.0  ;;  %v681_v4 = vld [vmem:[#allocation2 + $0x18] sm:$0x1]  ;;  %v706_v31 = vld [vmem:[#allocation2 + $0x1c] sm:$0x1]  ;;  %v587_v32 = vor.u32 %v585_v18, %v584_v25  ;;  %v498_v34 = vmax.f32 %v490_v22, 0.0 }
 0x160   : > { %v571_v33 = vor.u32 %v569_v20, %v568_v26  ;;  %v682_v35 = vsel %vm2806_vm13, 0, %v681_v4  ;;  %v707_v37 = vsel %vm2833_vm15, 0, %v706_v31  ;;  %v675_v38 = vld [vmem:[#allocation2 + $0x8] sm:$0x1]  ;;  %v588_v39 = vrot.slane %v584_v25, 4 }
 0x161   : > { %683 = vst [vmem:[#allocation2 + $0x18] sm:$0x1] %v682_v35  ;;  %708 = vst [vmem:[#allocation2 + $0x1c] sm:$0x1] %v707_v37  ;;  %v676_v40 = vsel %vm2806_vm13, 0, %v675_v38  ;;  %v657_v45 = vsel %vm2799_vm12, %v587_v32, %v656_v27  ;;  %v572_v46 = vrot.slane %v568_v26, 4  ;;  %v2160_v52 = vpack.c.bf16 %v500_v30, %v500_v30 }
 0x162   : > { %v700_v41 = vld [vmem:[#allocation2 + $0xc] sm:$0x1]  ;;  %v684_v44 = vld [vmem:[#allocation2 + $0x20] sm:$0x1]  ;;  %v645_v47 = vsel %vm2799_vm12, %v571_v33, %v644_v28  ;;  %677 = vst [vmem:[#allocation2 + $0x8] sm:$0x1] %v676_v40  ;;  %v660_v51 = vsel %vm2806_vm13, %v588_v39, %v659_v1  ;;  %v2158_v58 = vpack.c.bf16 %v498_v34, %v498_v34 }
 0x163   : > { %v701_v48 = vsel %vm2833_vm15, 0, %v700_v41  ;;  %v685_v49 = vsel %vm2806_vm13, 0, %v684_v44  ;;  %v709_v50 = vld [vmem:[#allocation2 + $0x24] sm:$0x1]  ;;  %658 = vst [vmem:[#allocation2 + $0x38] sm:$0xf] %v657_v45  ;;  %v648_v57 = vsel %vm2806_vm13, %v572_v46, %v647_v29 }
 0x164   : > { %646 = vst [vmem:[#allocation2 + $0x28] sm:$0xf] %v645_v47  ;;  %702 = vst [vmem:[#allocation2 + $0xc] sm:$0x1] %v701_v48  ;;  %v710_v53 = vsel %vm2833_vm15, 0, %v709_v50  ;;  %v590_v61 = vshrl.u32 %v2160_v52, 16 }
 0x165   : > { %686 = vst [vmem:[#allocation2 + $0x20] sm:$0x1] %v685_v49  ;;  %v678_v54 = vld [vmem:[#allocation2 + $0x10] sm:$0x1]  ;;  %v703_v55 = vld [vmem:[#allocation2 + $0x14] sm:$0x1] }
 0x166   : > { %661 = vst [vmem:[#allocation2 + $0x3c] sm:$0x1] %v660_v51  ;;  %711 = vst [vmem:[#allocation2 + $0x24] sm:$0x1] %v710_v53  ;;  %v679_v59 = vsel %vm2806_vm13, 0, %v678_v54  ;;  %v704_v60 = vsel %vm2833_vm15, 0, %v703_v55 }
 0x167   : > { %649 = vst [vmem:[#allocation2 + $0x2c] sm:$0x1] %v648_v57  ;;  %v593_v62 = vshll.u32 %v2160_v52, 16  ;;  %680 = vst [vmem:[#allocation2 + $0x10] sm:$0x1] %v679_v59  ;;  %v574_v63 = vshrl.u32 %v2158_v58, 16 }
 0x168   : > { %705 = vst [vmem:[#allocation2 + $0x14] sm:$0x1] %v704_v60  ;;  %v577_v0 = vshll.u32 %v2158_v58, 16  ;;  %v592_v2 = vrot.slane %v590_v61, 7  ;;  %v1506_v6 = vld [vmem:[#allocation2 + $0x20] sm:$0xe] }
 0x169   : > { %v576_v7 = vrot.slane %v574_v63, 7  ;;  %v1295_v12 = vld [vmem:[#allocation2 + $0x18] sm:$0xf]  ;;  %v2107_v19 = vrot.slane %v1506_v6, 9  ;;  %v1502_v4 = vld [vmem:[#allocation2 + $0x10] sm:$0xe] }
 0x16a   : > { %v595_v9 = vor.u32 %v593_v62, %v592_v2  ;;  %v596_v10 = vrot.slane %v592_v2, 4  ;;  %v1006_v13 = vld [vmem:[#allocation2 + $0x18] sm:$0xf]  ;;  %1312 = vrot.lane.b32.xlu1 %v1295_v12, %s2513_s30  ;;  %v1004_v32 = vld [vmem:[#allocation2 + $0x8] sm:$0xf]  ;;  %v1460_v37 = vshll.u32 %v2865_v17, 16 }
 0x16b   : > { %v693_v14 = vld [vmem:[#allocation2 + $0x38] sm:$0x1]  ;;  %v687_v15 = vld [vmem:[#allocation2 + $0x28] sm:$0x1]  ;;  %v579_v16 = vor.u32 %v577_v0, %v576_v7  ;;  %1024 = vrot.lane.b32.xlu0 %v1006_v13, %s2515_s18  ;;  %v1504_v18 = vld [vmem:[#allocation2 + $0x18] sm:$0xe] }
 0x16c   : > { %v694_v20 = vsel %vm2806_vm13, 0, %v693_v14  ;;  %v688_v22 = vsel %vm2806_vm13, 0, %v687_v15  ;;  %v663_v23 = vsel %vm2799_vm12, %v595_v9, %v662_v3  ;;  %v666_v27 = vsel %vm2806_vm13, %v596_v10, %v665_v5  ;;  %v1007_v34 = vld [vmem:[#allocation2 + $0x20] sm:$0xf]  ;;  %v910_v35 = vld [vmem:[#allocation2 + $0x18] sm:$0xe] }
 0x16d   : > { %v718_v21 = vld [vmem:[#allocation2 + $0x3c] sm:$0x1]  ;;  %v1507_v25 = vld [vmem:[#allocation2 + $0x24] sm:$0x1]  ;;  %695 = vst [vmem:[#allocation2 + $0x38] sm:$0x1] %v694_v20  ;;  %v651_v29 = vsel %vm2799_vm12, %v579_v16, %v650_v8 }
 0x16e   : > { %v719_v1 = vsel %vm2833_vm15, 0, %v718_v21  ;;  %689 = vst [vmem:[#allocation2 + $0x28] sm:$0x1] %v688_v22  ;;  %v712_v26 = vld [vmem:[#allocation2 + $0x2c] sm:$0x1]  ;;  %v580_v28 = vrot.slane %v576_v7, 4  ;;  %1026 = vrot.lane.b32.xlu1 %v1007_v34, %s2515_s18 }
 0x16f   : > { %664 = vst [vmem:[#allocation2 + $0x40] sm:$0xf] %v663_v23  ;;  %v1544_v30 = vrot.slane %v1507_v25, 5  ;;  %720 = vst [vmem:[#allocation2 + $0x3c] sm:$0x1] %v719_v1  ;;  %v713_v31 = vsel %vm2833_vm15, 0, %v712_v26  ;;  %1020 = vrot.lane.b32.xlu0 %v1004_v32, %s2515_s18 }
 0x170   : > { %667 = vst [vmem:[#allocation2 + $0x44] sm:$0x1] %v666_v27  ;;  %652 = vst [vmem:[#allocation2 + $0x30] sm:$0xf] %v651_v29  ;;  %v654_v33 = vsel %vm2806_vm13, %v580_v28, %v653_v11  ;;  %v1508_v39 = vld [vmem:[#allocation2 + $0x28] sm:$0xe] }
 0x171   : > { %714 = vst [vmem:[#allocation2 + $0x2c] sm:$0x1] %v713_v31  ;;  %v1545_v38 = vsel %vm2759_vm5, %v2107_v19, %v1544_v30  ;;  %655 = vst [vmem:[#allocation2 + $0x34] sm:$0x1] %v654_v33  ;;  %v911_v40 = vld [vmem:[#allocation2 + $0x1c] sm:$0x1] }
 0x172   : > { %v1201_v41 = vld [vmem:[#allocation2 + $0x18] sm:$0xe]  ;;  %v2106_v44 = vrot.slane %v1504_v18, 9  ;;  %1576 = vst.msk [vmem:[#allocation3 + $0x20] sm:$0xf] %vm614_vm1, %v1545_v38  ;;  %v2105_v45 = vrot.slane %v1502_v4, 9 }
 0x173   : > { %v1503_v46 = vld [vmem:[#allocation2 + $0x14] sm:$0x1]  ;;  %v1505_v47 = vld [vmem:[#allocation2 + $0x1c] sm:$0x1]  ;;  %v1296_v48 = vld [vmem:[#allocation2 + $0x20] sm:$0xf] }
 0x174   : > { %v1536_v49 = vrot.slane %v1503_v46, 5  ;;  %v1540_v50 = vrot.slane %v1505_v47, 5  ;;  %v1202_v51 = vld [vmem:[#allocation2 + $0x1c] sm:$0x1]  ;;  %v2108_v52 = vrot.slane %v1508_v39, 9  ;;  %1314 = vrot.lane.b32.xlu0 %v1296_v48, %s2513_s30  ;;  %v2092_v54 = vrot.slane %v910_v35, 9 }
 0x175   : > { %v1005_v53 = vld [vmem:[#allocation2 + $0x10] sm:$0xf]  ;;  %v953_v55 = vrot.slane %v911_v40, 5  ;;  %v2099_v57 = vrot.slane %v1201_v41, 9  ;;  %v1197_v58 = vld [vmem:[#allocation2 + $0x8] sm:$0xe] }
 0x176   : > { %v2891_v59 = vld [vmem:[#allocation2 + $0x38] sm:$0xe]  ;;  %v696_v60 = vld [vmem:[#allocation2 + $0x40] sm:$0x1]  ;;  %1022 = vrot.lane.b32.xlu1 %v1005_v53, %s2515_s18  ;;  %v1294_v61 = vld [vmem:[#allocation2 + $0x10] sm:$0xf]  ;;  %v1537_v62 = vsel %vm2759_vm5, %v2105_v45, %v1536_v49  ;;  %v1541_v63 = vsel %vm2759_vm5, %v2106_v44, %v1540_v50 }
 0x177   : > { %v1198_v0 = vld [vmem:[#allocation2 + $0xc] sm:$0x1]  ;;  %v912_v2 = vld [vmem:[#allocation2 + $0x20] sm:$0xe]  ;;  %v913_v3 = vld [vmem:[#allocation2 + $0x24] sm:$0x1]  ;;  %v954_v16 = vsel %vm2759_vm5, %v2092_v54, %v953_v55 }
 0x178   : > { %v697_v5 = vsel %vm2806_vm13, 0, %v696_v60  ;;  %v721_v6 = vld [vmem:[#allocation2 + $0x44] sm:$0x1]  ;;  %v690_v7 = vld [vmem:[#allocation2 + $0x30] sm:$0x1]  ;;  %v1239_v8 = vrot.slane %v1202_v51, 5  ;;  %1310 = vrot.lane.b32.xlu0 %v1294_v61, %s2513_s30 }
 0x179   : > { %1574 = vst.msk [vmem:[#allocation3 + $0x8] sm:$0xf] %vm614_vm1, %v1537_v62  ;;  %1575 = vst.msk [vmem:[#allocation3 + $0x14] sm:$0xf] %vm614_vm1, %v1541_v63  ;;  %v906_v9 = vld [vmem:[#allocation2 + $0x8] sm:$0xe] }
 0x17a   : > { %v1509_v10 = vld [vmem:[#allocation2 + $0x2c] sm:$0x1]  ;;  %698 = vst [vmem:[#allocation2 + $0x40] sm:$0x1] %v697_v5  ;;  %v722_v11 = vsel %vm2833_vm15, 0, %v721_v6  ;;  %v691_v13 = vsel %vm2806_vm13, 0, %v690_v7  ;;  %977 = vrot.lane.b32.xlu1 %v954_v16, %s2513_s30  ;;  %v1240_v26 = vsel %vm2759_vm5, %v2099_v57, %v1239_v8 }
 0x17b   : > { %v2904_v12 = vld [vmem:[#allocation2 + $0x40] sm:$0xe]  ;;  %v1548_v14 = vrot.slane %v1509_v10, 5  ;;  %723 = vst [vmem:[#allocation2 + $0x44] sm:$0x1] %v722_v11  ;;  %v1231_v18 = vrot.slane %v1198_v0, 5 }
 0x17c   : > { %692 = vst [vmem:[#allocation2 + $0x30] sm:$0x1] %v691_v13  ;;  %v715_v15 = vld [vmem:[#allocation2 + $0x34] sm:$0x1]  ;;  %v907_v19 = vld [vmem:[#allocation2 + $0xc] sm:$0x1]  ;;  %1265 = vrot.lane.b32.xlu0 %v1240_v26, %s2514_s10 }
 0x17d   : > { %v716_v20 = vsel %vm2833_vm15, 0, %v715_v15  ;;  %v2913_v21 = vld [vmem:[#allocation2 + $0x30] sm:$0xe]  ;;  %v2097_v42 = vrot.slane %v1197_v58, 9  ;;  %v2110_v22 = vrot.slane %v2891_v59, 9  ;;  %v1549_v23 = vsel %vm2759_vm5, %v2108_v52, %v1548_v14  ;;  %v2319_v60 = vld [vmem:[#allocation9 + $0x40] sm:$0xff]  }
 0x17e   : > { %717 = vst [vmem:[#allocation2 + $0x34] sm:$0x1] %v716_v20  ;;  %v2093_v25 = vrot.slane %v912_v2, 9  ;;  %v957_v1 = vrot.slane %v913_v3, 5  ;;  %1577 = vst.msk [vmem:[#allocation3 + $0x2c] sm:$0xf] %vm614_vm1, %v1549_v23  ;;  %2167 = vmatprep.subr.bf16.mxu1 %v2319_v60 }
 0x17f   : > { %v2090_v24 = vrot.slane %v906_v9, 9  ;;  %v945_v27 = vrot.slane %v907_v19, 5  ;;  %v908_v28 = vld [vmem:[#allocation2 + $0x10] sm:$0xe]  ;;  %v909_v29 = vld [vmem:[#allocation2 + $0x14] sm:$0x1]  ;;  %v1232_v31 = vsel %vm2759_vm5, %v2097_v42, %v1231_v18 }
 0x180   : > { %v2111_v30 = vrot.slane %v2904_v12, 9  ;;  %v2109_v4 = vrot.slane %v2913_v21, 9  ;;  %v1203_v32 = vld [vmem:[#allocation2 + $0x20] sm:$0xe]  ;;  %v1204_v33 = vld [vmem:[#allocation2 + $0x24] sm:$0x1]  ;;  %1261 = vrot.lane.b32.xlu1 %v1232_v31, %s2514_s10  ;;  %v958_v41 = vsel %vm2759_vm5, %v2093_v25, %v957_v1 }
 0x181   : > { %v2314_v34 = vld [vmem:[#allocation3 + $0x8] ss:$12 sps:$4 sm:$0xff]   ;;  %v2091_v35 = vrot.slane %v908_v28, 9  ;;  %v949_v38 = vrot.slane %v909_v29, 5  ;;  %v1200_v39 = vld [vmem:[#allocation2 + $0x14] sm:$0x1]  ;;  %v946_v44 = vsel %vm2759_vm5, %v2090_v24, %v945_v27  ;;  %979 = vrot.lane.b32.xlu0 %v958_v41, %s2513_s30 }
 0x182   : > { %v1513_v40 = vld [vmem:[#allocation2 + $0x3c] sm:$0x1]  ;;  %2227 = vmatprep.mubr.msk.bf16.mxu0 %vm1802_vm0, %v2314_v34  ;;  %v2100_v45 = vrot.slane %v1203_v32, 9  ;;  %v1199_v46 = vld [vmem:[#allocation2 + $0x10] sm:$0xe]  ;;  %v1243_v50 = vrot.slane %v1204_v33, 5 }
 0x183   : > { %v1556_v47 = vrot.slane %v1513_v40, 5  ;;  %v1515_v48 = vld [vmem:[#allocation2 + $0x44] sm:$0x1]  ;;  %v742_v49 = vld [vmem:[#allocation2 + $0x8] sm:$0xf]  ;;  %v1235_v55 = vrot.slane %v1200_v39, 5  ;;  %v950_v62 = vsel %vm2759_vm5, %v2091_v35, %v949_v38 }
 0x184   : > { %v1560_v51 = vrot.slane %v1515_v48, 5  ;;  %v743_v52 = vld [vmem:[#allocation2 + $0xc] sm:$0x1]  ;;  %v774_v53 = vshrl.u32 %v742_v49, 16  ;;  %v777_v54 = vshll.u32 %v742_v49, 16  ;;  %973 = vrot.lane.b32.xlu1 %v946_v44, %s2513_s30  ;;  %v1244_v8 = vsel %vm2759_vm5, %v2100_v45, %v1243_v50  ;;  %v2320_v13 = vld [vmem:[#allocation9] sm:$0xff]  }
 0x185   : > { %v1511_v57 = vld [vmem:[#allocation2 + $0x34] sm:$0x1]  ;;  %v1557_v58 = vsel %vm2759_vm5, %v2110_v22, %v1556_v47  ;;  %v1344_v59 = vld [vmem:[#allocation2 + $0x18] sm:$0xf]  ;;  %v2316_v61 = vld [vmem:[#allocation3 + $0x20] ss:$12 sps:$4 sm:$0xff]   ;;  %975 = vrot.lane.b32.xlu0 %v950_v62, %s2513_s30  ;;  %2168 = vmatpush3.bf16.msra.mxu1 %v2320_v13 }
 0x186   : > { %v1552_v63 = vrot.slane %v1511_v57, 5  ;;  %1579 = vst.msk [vmem:[#allocation3 + $0x44] sm:$0xf] %vm614_vm1, %v1557_v58  ;;  %v1561_v0 = vsel %vm2759_vm5, %v2111_v30, %v1560_v51  ;;  %v776_v2 = vrot.slane %v774_v53, 4  ;;  %v779_v3 = vrot.slane %v777_v54, 5  ;;  %2228 = vmatmul.mubr.msk.bf16.vlgmr.msra.gmra.mrb[8].mxu0 %vm1802_vm0, %v2316_v61  ;;  %v2321_v21 = vld [vmem:[#allocation9 + $0x48] sm:$0xff]  }
 0x187   : > { %1580 = vst.msk [vmem:[#allocation3 + $0x50] sm:$0xf] %vm614_vm1, %v1561_v0  ;;  %v783_v5 = vshll.u32 %v743_v52, 16  ;;  %v1373_v6 = vshrl.u32 %v1344_v59, 16  ;;  %v1376_v7 = vshll.u32 %v1344_v59, 16  ;;  %v2098_v9 = vrot.slane %v1199_v46, 9  ;;  %2169 = vmatprep.subr.bf16.mxu1 %v2321_v21 }
 0x188   : > { %v1553_v10 = vsel %vm2759_vm5, %v2109_v4, %v1552_v63  ;;  %v746_v11 = vld [vmem:[#allocation2 + $0x18] sm:$0xf]  ;;  %v2951_v12 = vrot.slane %v1457_v36, 4  ;;  %1267 = vrot.lane.b32.xlu1 %v1244_v8, %s2514_s10  ;;  %v1008_v14 = vld [vmem:[#allocation2 + $0x28] sm:$0xf]  ;;  %v780_v15 = vor.u32 %v779_v3, %v776_v2  ;;  %v2959_v36 = vrot.slane %v1460_v37, 5 }
 0x189   : > { %1578 = vst.msk [vmem:[#allocation3 + $0x38] sm:$0xf] %vm614_vm1, %v1553_v10  ;;  %v1345_v16 = vld [vmem:[#allocation2 + $0x1c] sm:$0x1]  ;;  %v1375_v18 = vrot.slane %v1373_v6, 4  ;;  %v1378_v19 = vrot.slane %v1376_v7, 5  ;;  %v1236_v42 = vsel %vm2759_vm5, %v2098_v9, %v1235_v55  ;;  %1028 = vrot.lane.b32.xlu0 %v1008_v14, %s2515_s18 }
 0x18a   : > { %v802_v20 = vshrl.u32 %v746_v11, 16  ;;  %v747_v22 = vld [vmem:[#allocation2 + $0x1c] sm:$0x1]  ;;  %v805_v23 = vshll.u32 %v746_v11, 16  ;;  %v1346_v25 = vld [vmem:[#allocation2 + $0x20] sm:$0xf] }
 0x18b   : > { %v781_v1 = vrot.slane %v780_v15, 4  ;;  %v785_v26 = vrot.slane %v783_v5, 5  ;;  %v1347_v27 = vld [vmem:[#allocation2 + $0x24] sm:$0x1]  ;;  %v1387_v28 = vshrl.u32 %v1346_v25, 16  ;;  %v1379_v29 = vor.u32 %v1378_v19, %v1375_v18  ;;  %v2323_v3 = vld [vmem:[#allocation9 + $0x50] sm:$0xff]  }
 0x18c   : > { %v804_v24 = vrot.slane %v802_v20, 4  ;;  %v1382_v30 = vshll.u32 %v1345_v16, 16  ;;  %v807_v4 = vrot.slane %v805_v23, 5  ;;  %v1390_v31 = vshll.u32 %v1346_v25, 16  ;;  %1263 = vrot.lane.b32.xlu1 %v1236_v42, %s2514_s10  ;;  %v748_v17 = vld [vmem:[#allocation2 + $0x20] sm:$0xf] }
 0x18d   : > { %v811_v32 = vshll.u32 %v747_v22, 16  ;;  %v1389_v33 = vrot.slane %v1387_v28, 4  ;;  %v1299_v37 = vld [vmem:[#allocation2 + $0x38] sm:$0xf]  ;;  %v1396_v38 = vshll.u32 %v1347_v27, 16  ;;  %v786_v40 = vsel %vm2766_vm8, %v781_v1, %v785_v26  ;;  %v2322_v61 = vld [vmem:[#allocation9 + $0x8] sm:$0xff]  }
 0x18e   : > { %v808_v34 = vor.u32 %v807_v4, %v804_v24  ;;  %v1392_v35 = vrot.slane %v1390_v31, 5  ;;  %v2318_v39 = vld [vmem:[#allocation3 + $0x50] ss:$12 sps:$4 sm:$0xff]   ;;  %v749_v41 = vld [vmem:[#allocation2 + $0x24] sm:$0x1]  ;;  %v816_v44 = vshrl.u32 %v748_v17, 16  ;;  %873 = vrot.lane.b32.xlu0 %v786_v40, %s2514_s10  ;;  %2170 = vmatpush3.bf16.msra.mxu1 %v2322_v61 }
 0x18f   : > { %v819_v45 = vshll.u32 %v748_v17, 16  ;;  %v1380_v47 = vrot.slane %v1379_v29, 4  ;;  %v825_v49 = vshll.u32 %v749_v41, 16  ;;  %v1384_v50 = vrot.slane %v1382_v30, 5  ;;  %v1300_v51 = vld [vmem:[#allocation2 + $0x40] sm:$0xf]  ;;  %2171 = vmatprep.subr.bf16.mxu1 %v2323_v3 }
 0x190   : > { %v2317_v46 = vld [vmem:[#allocation3 + $0x38] ss:$12 sps:$4 sm:$0xff]   ;;  %v1393_v48 = vor.u32 %v1392_v35, %v1389_v33  ;;  %1320 = vrot.lane.b32.xlu1 %v1299_v37, %s2513_s30  ;;  %v813_v52 = vrot.slane %v811_v32, 5  ;;  %v818_v53 = vrot.slane %v816_v44, 4  ;;  %v2967_v55 = vld [vmem:[#allocation2 + $0x38] sm:$0xe] }
 0x191   : > { %v821_v54 = vrot.slane %v819_v45, 5  ;;  %2231 = vmatprep.mubr.msk.bf16.mxu0 %vm1802_vm0, %v2317_v46  ;;  %v809_v57 = vrot.slane %v808_v34, 4  ;;  %v1398_v59 = vrot.slane %v1396_v38, 5  ;;  %v1210_v60 = vld [vmem:[#allocation2 + $0x3c] sm:$0x1]  ;;  %v827_v63 = vrot.slane %v825_v49, 5 }
 0x192   : > { %v1394_v58 = vrot.slane %v1393_v48, 4  ;;  %2232 = vmatmul.mubr.msk.bf16.gmra.mrb[12].mxu0 %vm1802_vm0, %v2318_v39  ;;  %v2971_v0 = vld [vmem:[#allocation2 + $0x38] sm:$0xe]  ;;  %v2973_v2 = vld [vmem:[#allocation2 + $0x3c] sm:$0x1]  ;;  %v1385_v5 = vsel %vm2766_vm8, %v1380_v47, %v1384_v50  ;;  %1322 = vrot.lane.b32.xlu0 %v1300_v51, %s2513_s30  ;;  %v2103_v6 = vrot.slane %v2967_v55, 9 }
 0x193   : > { %v822_v62 = vor.u32 %v821_v54, %v818_v53  ;;  %v1255_v7 = vrot.slane %v1210_v60, 5  ;;  %v1342_v8 = vld [vmem:[#allocation2 + $0x10] sm:$0xf]  ;;  %v1343_v9 = vld [vmem:[#allocation2 + $0x14] sm:$0x1]  ;;  %v2096_v10 = vrot.slane %v2971_v0, 9  ;;  %v814_v16 = vsel %vm2766_vm8, %v809_v57, %v813_v52 }
 0x194   : > { %1472 = vrot.lane.b32.xlu1 %v1385_v5, %s2515_s18  ;;  %v1359_v11 = vshrl.u32 %v1342_v8, 16  ;;  %v1362_v13 = vshll.u32 %v1342_v8, 16  ;;  %v914_v14 = vld [vmem:[#allocation2 + $0x28] sm:$0xe]  ;;  %v969_v18 = vrot.slane %v2973_v2, 5  ;;  %v1368_v19 = vshll.u32 %v1343_v9, 16 }
 0x195   : > { %v2324_v15 = vld [vmem:[#allocation9 + $0x10] sm:$0xff]   ;;  %v744_v21 = vld [vmem:[#allocation2 + $0x10] sm:$0xf]  ;;  %v1399_v42 = vsel %vm2766_vm8, %v1394_v58, %v1398_v59  ;;  %v823_v22 = vrot.slane %v822_v62, 4  ;;  %v745_v1 = vld [vmem:[#allocation2 + $0x14] sm:$0x1]  ;;  %v1256_v49 = vsel %vm2759_vm5, %v2103_v6, %v1255_v7 }
 0x196   : > { %v915_v20 = vld [vmem:[#allocation2 + $0x2c] sm:$0x1]  ;;  %v1361_v23 = vrot.slane %v1359_v11, 4  ;;  %v1364_v25 = vrot.slane %v1362_v13, 5  ;;  %v2325_v26 = vld [vmem:[#allocation9 + $0x58] sm:$0xff]   ;;  %1474 = vrot.lane.b32.xlu0 %v1399_v42, %s2515_s18  ;;  %v2094_v24 = vrot.slane %v914_v14, 9  ;;  %2172 = vmatpush3.bf16.msra.mxu1 %v2324_v15  ;;  %v970_v57 = vsel %vm2759_vm5, %v2096_v10, %v969_v18 }
 0x197   : > { %v961_v27 = vrot.slane %v915_v20, 5  ;;  %v788_v28 = vshrl.u32 %v744_v21, 16  ;;  %v791_v29 = vshll.u32 %v744_v21, 16  ;;  %v1211_v30 = vld [vmem:[#allocation2 + $0x40] sm:$0xe]  ;;  %v2988_v31 = vrot.slane %v1368_v19, 5  ;;  %2173 = vmatprep.subr.bf16.mxu1 %v2325_v26 }
 0x198   : > { %877 = vrot.lane.b32.xlu1 %v814_v16, %s2514_s10  ;;  %v1365_v4 = vor.u32 %v1364_v25, %v1361_v23  ;;  %v1212_v32 = vld [vmem:[#allocation2 + $0x44] sm:$0x1]  ;;  %v1205_v33 = vld [vmem:[#allocation2 + $0x28] sm:$0xe]  ;;  %v2326_v17 = vld [vmem:[#allocation9 + $0x18] sm:$0xff]   ;;  %v797_v38 = vshll.u32 %v745_v1, 16  ;;  %v828_v41 = vsel %vm2766_vm8, %v823_v22, %v827_v63 }
 0x199   : > { %v1297_v37 = vld [vmem:[#allocation2 + $0x28] sm:$0xf]  ;;  %v790_v34 = vrot.slane %v788_v28, 4  ;;  %v793_v35 = vrot.slane %v791_v29, 5  ;;  %v2104_v39 = vrot.slane %v1211_v30, 9  ;;  %v1259_v45 = vrot.slane %v1212_v32, 5 }
 0x19a   : > { %v1206_v40 = vld [vmem:[#allocation2 + $0x2c] sm:$0x1]  ;;  %v2992_v44 = vrot.slane %v1365_v4, 4  ;;  %v2101_v46 = vrot.slane %v1205_v33, 9  ;;  %v1207_v47 = vld [vmem:[#allocation2 + $0x30] sm:$0xe]  ;;  %879 = vrot.lane.b32.xlu0 %v828_v41, %s2514_s10  ;;  %2174 = vmatpush3.bf16.msra.mxu1 %v2326_v17  ;;  %v3004_v58 = vsel %vm2759_vm5, %v2094_v24, %v961_v27 }
 0x19b   : > { %v2327_v48 = vld [vmem:[#allocation9 + $0x60] sm:$0xff]   ;;  %v794_v50 = vor.u32 %v793_v35, %v790_v34  ;;  %v1247_v51 = vrot.slane %v1206_v40, 5  ;;  %v1208_v52 = vld [vmem:[#allocation2 + $0x34] sm:$0x1]  ;;  %v2997_v53 = vld [vmem:[#allocation2 + $0x30] sm:$0xe]  ;;  %v3012_v7 = vsel %vm2759_vm5, %v2104_v39, %v1259_v45 }
 0x19c   : > { %v2328_v54 = vld [vmem:[#allocation9 + $0x20] sm:$0xff]   ;;  %1316 = vrot.lane.b32.xlu1 %v1297_v37, %s2513_s30  ;;  %v1298_v55 = vld [vmem:[#allocation2 + $0x30] sm:$0xf]  ;;  %v2102_v59 = vrot.slane %v1207_v47, 9  ;;  %v1251_v60 = vrot.slane %v1208_v52, 5  ;;  %2175 = vmatprep.subr.bf16.mxu1 %v2327_v48  ;;  %v3008_v2 = vrot.slane %v797_v38, 5  ;;  %v1371_v14 = vsel %vm2766_vm8, %v2992_v44, %v2988_v31 }
 0x19d   : > { %v917_v61 = vld [vmem:[#allocation2 + $0x34] sm:$0x1]  ;;  %v1352_v62 = vld [vmem:[#allocation2 + $0x38] sm:$0xf]  ;;  %v1009_v63 = vld [vmem:[#allocation2 + $0x30] sm:$0xf]  ;;  %v3022_v15 = vsel %vm2759_vm5, %v2101_v46, %v1247_v51 }
 0x19e   : > { %v3006_v0 = vrot.slane %v794_v50, 4  ;;  %v1353_v3 = vld [vmem:[#allocation2 + $0x3c] sm:$0x1]  ;;  %v1429_v5 = vshrl.u32 %v1352_v62, 16  ;;  %v1432_v6 = vshll.u32 %v1352_v62, 16  ;;  %v2095_v8 = vrot.slane %v2997_v53, 9  ;;  %1318 = vrot.lane.b32.xlu0 %v1298_v55, %s2513_s30  ;;  %2176 = vmatpush3.bf16.msra.mxu1 %v2328_v54 }
 0x19f   : > { %v965_v9 = vrot.slane %v917_v61, 5  ;;  %v1438_v10 = vshll.u32 %v1353_v3, 16  ;;  %v754_v11 = vld [vmem:[#allocation2 + $0x38] sm:$0xf]  ;;  %v2329_v13 = vld [vmem:[#allocation9 + $0x68] sm:$0xff]   ;;  %v3031_v42 = vsel %vm2759_vm5, %v2102_v59, %v1251_v60  ;;  %v2331_v46 = vld [vmem:[#allocation9 + $0x70] sm:$0xff]  }
 0x1a0   : > { %v1431_v16 = vrot.slane %v1429_v5, 4  ;;  %v1434_v18 = vrot.slane %v1432_v6, 5  ;;  %v755_v19 = vld [vmem:[#allocation2 + $0x3c] sm:$0x1]  ;;  %v1350_v20 = vld [vmem:[#allocation2 + $0x30] sm:$0xf]  ;;  %1030 = vrot.lane.b32.xlu1 %v1009_v63, %s2515_s18  ;;  %v800_v21 = vsel %vm2766_vm8, %v3006_v0, %v3008_v2  ;;  %2177 = vmatprep.subr.bf16.mxu1 %v2329_v13 }
 0x1a1   : > { %v858_v22 = vshrl.u32 %v754_v11, 16  ;;  %v861_v23 = vshll.u32 %v754_v11, 16  ;;  %v1351_v25 = vld [vmem:[#allocation2 + $0x34] sm:$0x1]  ;;  %v867_v26 = vshll.u32 %v755_v19, 16  ;;  %v1415_v24 = vshrl.u32 %v1350_v20, 16 }
 0x1a2   : > { %v1435_v1 = vor.u32 %v1434_v18, %v1431_v16  ;;  %v1418_v27 = vshll.u32 %v1350_v20, 16  ;;  %v1348_v28 = vld [vmem:[#allocation2 + $0x28] sm:$0xf]  ;;  %v2330_v29 = vld [vmem:[#allocation9 + $0x28] sm:$0xff]   ;;  %v1424_v31 = vshll.u32 %v1351_v25, 16  ;;  %1273 = vrot.lane.b32.xlu0 %v1256_v49, %s2514_s10  ;;  %v3036_v37 = vrot.slane %v1438_v10, 5 }
 0x1a3   : > { %v860_v30 = vrot.slane %v858_v22, 4  ;;  %v863_v4 = vrot.slane %v861_v23, 5  ;;  %v1349_v32 = vld [vmem:[#allocation2 + $0x2c] sm:$0x1]  ;;  %v1401_v33 = vshrl.u32 %v1348_v28, 16  ;;  %v1417_v34 = vrot.slane %v1415_v24, 4  ;;  %2178 = vmatpush3.bf16.msra.mxu1 %v2330_v29 }
 0x1a4   : > { %v3034_v17 = vrot.slane %v1435_v1, 4  ;;  %v1420_v35 = vrot.slane %v1418_v27, 5  ;;  %v750_v38 = vld [vmem:[#allocation2 + $0x28] sm:$0xf]  ;;  %985 = vrot.lane.b32.xlu1 %v970_v57, %s2513_s30  ;;  %v1404_v41 = vshll.u32 %v1348_v28, 16  ;;  %v1410_v44 = vshll.u32 %v1349_v32, 16  ;;  %2179 = vmatprep.subr.bf16.mxu1 %v2331_v46 }
 0x1a5   : > { %v864_v39 = vor.u32 %v863_v4, %v860_v30  ;;  %v1403_v40 = vrot.slane %v1401_v33, 4  ;;  %v751_v45 = vld [vmem:[#allocation2 + $0x2c] sm:$0x1]  ;;  %v3041_v47 = vsel %vm2759_vm5, %v2095_v8, %v965_v9  ;;  %v830_v49 = vshrl.u32 %v750_v38, 16  ;;  %v752_v51 = vld [vmem:[#allocation2 + $0x30] sm:$0xf] }
 0x1a6   : > { %v1421_v48 = vor.u32 %v1420_v35, %v1417_v34  ;;  %v833_v50 = vshll.u32 %v750_v38, 16  ;;  %v3043_v52 = vrot.slane %v867_v26, 5  ;;  %v3045_v53 = vrot.slane %v1424_v31, 5  ;;  %v753_v57 = vld [vmem:[#allocation2 + $0x34] sm:$0x1]  ;;  %1470 = vrot.lane.b32.xlu0 %v1371_v14, %s2515_s18 }
 0x1a7   : > { %v1406_v54 = vrot.slane %v1404_v41, 5  ;;  %v839_v55 = vshll.u32 %v751_v45, 16  ;;  %v3048_v59 = vrot.slane %v864_v39, 4  ;;  %v832_v60 = vrot.slane %v830_v49, 4  ;;  %v1354_v62 = vld [vmem:[#allocation2 + $0x40] sm:$0xf] }
 0x1a8   : > { %v835_v43 = vrot.slane %v833_v50, 5  ;;  %v844_v61 = vshrl.u32 %v752_v51, 16  ;;  %981 = vrot.lane.b32.xlu1 %v3004_v58, %s2513_s30  ;;  %v1441_v63 = vsel %vm2766_vm8, %v3034_v17, %v3036_v37  ;;  %v3056_v5 = vrot.slane %v1410_v44, 5  ;;  %v1355_v8 = vld [vmem:[#allocation2 + $0x44] sm:$0x1]  ;;  %v2333_v41 = vld [vmem:[#allocation9 + $0x78] sm:$0xff]  }
 0x1a9   : > { %v1407_v3 = vor.u32 %v1406_v54, %v1403_v40  ;;  %v847_v6 = vshll.u32 %v752_v51, 16  ;;  %v1057_v9 = vld [vmem:[#allocation2 + $0x18] sm:$0xf]  ;;  %v3058_v10 = vrot.slane %v1421_v48, 4  ;;  %v853_v14 = vshll.u32 %v753_v57, 16 }
 0x1aa   : > { %v836_v11 = vor.u32 %v835_v43, %v832_v60  ;;  %v846_v13 = vrot.slane %v844_v61, 4  ;;  %v1058_v16 = vld [vmem:[#allocation2 + $0x1c] sm:$0x1]  ;;  %v3060_v18 = vrot.slane %v839_v55, 5  ;;  %v1443_v19 = vshrl.u32 %v1354_v62, 16  ;;  %875 = vrot.lane.b32.xlu0 %v800_v21, %s2514_s10 }
 0x1ab   : > { %v849_v58 = vrot.slane %v847_v6, 5  ;;  %v1446_v20 = vshll.u32 %v1354_v62, 16  ;;  %v1053_v22 = vld [vmem:[#allocation2 + $0x8] sm:$0xf]  ;;  %v3068_v23 = vrot.slane %v1407_v3, 4  ;;  %v1452_v1 = vshll.u32 %v1355_v8, 16 }
 0x1ac   : > { %v3070_v25 = vrot.slane %v836_v11, 4  ;;  %v1098_v26 = vshrl.u32 %v1057_v9, 16  ;;  %v1054_v24 = vld [vmem:[#allocation2 + $0xc] sm:$0x1]  ;;  %1275 = vrot.lane.b32.xlu1 %v3012_v7, %s2514_s10  ;;  %v3074_v28 = vrot.slane %v853_v14, 5  ;;  %v3076_v29 = vrot.slane %v1443_v19, 4 }
 0x1ad   : > { %v850_v27 = vor.u32 %v849_v58, %v846_v13  ;;  %v3078_v30 = vrot.slane %v1446_v20, 5  ;;  %v1059_v4 = vld [vmem:[#allocation2 + $0x20] sm:$0xf]  ;;  %v870_v0 = vsel %vm2766_vm8, %v3048_v59, %v3043_v52  ;;  %v3084_v2 = vrot.slane %v1452_v1, 5  ;;  %v1060_v32 = vld [vmem:[#allocation2 + $0x24] sm:$0x1] }
 0x1ae   : > { %v1100_v21 = vrot.slane %v1098_v26, 4  ;;  %v1101_v31 = vshll.u32 %v1057_v9, 16  ;;  %v1055_v33 = vld [vmem:[#allocation2 + $0x10] sm:$0xf]  ;;  %v2332_v7 = vld [vmem:[#allocation9 + $0x30] sm:$0xff]   ;;  %v1427_v34 = vsel %vm2766_vm8, %v3058_v10, %v3045_v53  ;;  %v1107_v38 = vshll.u32 %v1058_v16, 16  ;;  %1269 = vrot.lane.b32.xlu0 %v3022_v15, %s2514_s10 }
 0x1af   : > { %v3090_v35 = vrot.slane %v850_v27, 4  ;;  %v1070_v39 = vshrl.u32 %v1053_v22, 16  ;;  %v725_v40 = vld [vmem:[#allocation2 + $0x8] sm:$0xf]  ;;  %v1073_v45 = vshll.u32 %v1053_v22, 16  ;;  %v1079_v46 = vshll.u32 %v1054_v24, 16  ;;  %2180 = vmatpush3.bf16.msra.mxu1 %v2332_v7 }
 0x1b0   : > { %v1103_v44 = vrot.slane %v1101_v31, 5  ;;  %v1112_v48 = vshrl.u32 %v1059_v4, 16  ;;  %733 = vst.msk [vmem:[#allocation3 + $0xc] sm:$0xf] %vm614_vm1, %v725_v40  ;;  %v727_v49 = vld [vmem:[#allocation2 + $0x18] sm:$0xf]  ;;  %1271 = vrot.lane.b32.xlu1 %v3031_v42, %s2514_s10  ;;  %v1413_v50 = vsel %vm2766_vm8, %v3068_v23, %v3056_v5  ;;  %v1449_v51 = vor.u32 %v3078_v30, %v3076_v29  ;;  %2181 = vmatprep.subr.bf16.mxu1 %v2333_v41 }
 0x1b1   : > { %v856_v15 = vsel %vm2766_vm8, %v3090_v35, %v3074_v28  ;;  %v1072_v54 = vrot.slane %v1070_v39, 4  ;;  %v1056_v55 = vld [vmem:[#allocation2 + $0x14] sm:$0x1]  ;;  %735 = vst.msk [vmem:[#allocation3 + $0x24] sm:$0xf] %vm614_vm1, %v727_v49  ;;  %v1109_v43 = vrot.slane %v1107_v38, 5 }
 0x1b2   : > { %v728_v57 = vld [vmem:[#allocation2 + $0x20] sm:$0xf]  ;;  %v2334_v42 = vld [vmem:[#allocation9 + $0x38] sm:$0xff]   ;;  %v1104_v60 = vor.u32 %v1103_v44, %v1100_v21  ;;  %v1075_v61 = vrot.slane %v1073_v45, 5  ;;  %v1081_v62 = vrot.slane %v1079_v46, 5  ;;  %v1114_v6 = vrot.slane %v1112_v48, 4  ;;  %983 = vrot.lane.b32.xlu0 %v3041_v47, %s2513_s30 }
 0x1b3   : > { %736 = vst.msk [vmem:[#allocation3 + $0x30] sm:$0xf] %vm614_vm1, %v728_v57  ;;  %v1065_v3 = vld [vmem:[#allocation2 + $0x38] sm:$0xf]  ;;  %v1115_v8 = vshll.u32 %v1059_v4, 16  ;;  %v1121_v9 = vshll.u32 %v1060_v32, 16  ;;  %2182 = vmatpush3.bf16.msra.mxu1 %v2334_v42 }
 0x1b4   : > { %v1084_v11 = vshrl.u32 %v1055_v33, 16  ;;  %v1066_v13 = vld [vmem:[#allocation2 + $0x3c] sm:$0x1]  ;;  %v1105_v14 = vrot.slane %v1104_v60, 4  ;;  %v1076_v16 = vor.u32 %v1075_v61, %v1072_v54  ;;  %v1087_v58 = vshll.u32 %v1055_v33, 16  ;;  %1480 = vrot.lane.b32.xlu1 %v1441_v63, %s2515_s18 }
 0x1b5   : > { %v1093_v19 = vshll.u32 %v1056_v55, 16  ;;  %v726_v20 = vld [vmem:[#allocation2 + $0x10] sm:$0xf]  ;;  %v1010_v22 = vld [vmem:[#allocation2 + $0x38] sm:$0xf]  ;;  %v1117_v1 = vrot.slane %v1115_v8, 5 }
 0x1b6   : > { %v1123_v26 = vrot.slane %v1121_v9, 5  ;;  %v1086_v24 = vrot.slane %v1084_v11, 4  ;;  %v1154_v27 = vshrl.u32 %v1065_v3, 16  ;;  %734 = vst.msk [vmem:[#allocation3 + $0x18] sm:$0xf] %vm614_vm1, %v726_v20  ;;  %v1110_v4 = vsel %vm2766_vm8, %v1105_v14, %v1109_v43  ;;  %1032 = vrot.lane.b32.xlu0 %v1010_v22, %s2515_s18 }
 0x1b7   : > { %v1067_v47 = vld [vmem:[#allocation2 + $0x40] sm:$0xf]  ;;  %v1077_v21 = vrot.slane %v1076_v16, 4  ;;  %v1089_v31 = vrot.slane %v1087_v58, 5  ;;  %v1095_v32 = vrot.slane %v1093_v19, 5  ;;  %v1118_v7 = vor.u32 %v1117_v1, %v1114_v6 }
 0x1b8   : > { %v1068_v33 = vld [vmem:[#allocation2 + $0x44] sm:$0x1]  ;;  %1191 = vst.msk [vmem:[#allocation3 + $0x1c] sm:$0xf] %vm614_vm1, %v1110_v4  ;;  %v1156_v17 = vrot.slane %v1154_v27, 4  ;;  %v1157_v37 = vshll.u32 %v1065_v3, 16  ;;  %885 = vrot.lane.b32.xlu1 %v870_v0, %s2514_s10 }
 0x1b9   : > { %v1163_v63 = vshll.u32 %v1066_v13, 16  ;;  %v1061_v38 = vld [vmem:[#allocation2 + $0x28] sm:$0xf]  ;;  %v1082_v39 = vsel %vm2766_vm8, %v1077_v21, %v1081_v62  ;;  %v1090_v40 = vor.u32 %v1089_v31, %v1086_v24  ;;  %v1168_v41 = vshrl.u32 %v1067_v47, 16  ;;  %v1062_v45 = vld [vmem:[#allocation2 + $0x2c] sm:$0x1] }
 0x1ba   : > { %v1171_v44 = vshll.u32 %v1067_v47, 16  ;;  %v1063_v46 = vld [vmem:[#allocation2 + $0x30] sm:$0xf]  ;;  %1189 = vst.msk [vmem:[#allocation3 + $0x4] sm:$0xf] %vm614_vm1, %v1082_v39  ;;  %v1119_v48 = vrot.slane %v1118_v7, 4  ;;  %1478 = vrot.lane.b32.xlu0 %v1427_v34, %s2515_s18 }
 0x1bb   : > { %v1159_v49 = vrot.slane %v1157_v37, 5  ;;  %v1165_v54 = vrot.slane %v1163_v63, 5  ;;  %v1177_v55 = vshll.u32 %v1068_v33, 16  ;;  %v1064_v57 = vld [vmem:[#allocation2 + $0x34] sm:$0x1]  ;;  %v1091_v42 = vrot.slane %v1090_v40, 4 }
 0x1bc   : > { %v1170_v60 = vrot.slane %v1168_v41, 4  ;;  %v1173_v43 = vrot.slane %v1171_v44, 5  ;;  %v1126_v61 = vshrl.u32 %v1061_v38, 16  ;;  %v731_v62 = vld [vmem:[#allocation2 + $0x38] sm:$0xf]  ;;  %v1124_v3 = vsel %vm2766_vm8, %v1119_v48, %v1123_v26  ;;  %1476 = vrot.lane.b32.xlu1 %v1413_v50, %s2515_s18 }
 0x1bd   : > { %v1160_v6 = vor.u32 %v1159_v49, %v1156_v17  ;;  %v1179_v8 = vrot.slane %v1177_v55, 5  ;;  %v1129_v9 = vshll.u32 %v1061_v38, 16  ;;  %739 = vst.msk [vmem:[#allocation3 + $0x54] sm:$0xf] %vm614_vm1, %v731_v62  ;;  %v729_v52 = vld [vmem:[#allocation2 + $0x28] sm:$0xf]  ;;  %v1096_v0 = vsel %vm2766_vm8, %v1091_v42, %v1095_v32 }
 0x1be   : > { %v730_v59 = vld [vmem:[#allocation2 + $0x30] sm:$0xf]  ;;  %1192 = vst.msk [vmem:[#allocation3 + $0x28] sm:$0xf] %vm614_vm1, %v1124_v3  ;;  %v1174_v11 = vor.u32 %v1173_v43, %v1170_v60  ;;  %v1128_v13 = vrot.slane %v1126_v61, 4  ;;  %v1135_v14 = vshll.u32 %v1062_v45, 16  ;;  %v842_v50 = vsel %vm2766_vm8, %v3070_v25, %v3060_v18  ;;  %883 = vrot.lane.b32.xlu0 %v856_v15, %s2514_s10 }
 0x1bf   : > { %737 = vst.msk [vmem:[#allocation3 + $0x3c] sm:$0xf] %vm614_vm1, %v729_v52  ;;  %738 = vst.msk [vmem:[#allocation3 + $0x48] sm:$0xf] %vm614_vm1, %v730_v59  ;;  %v1161_v53 = vrot.slane %v1160_v6, 4  ;;  %v1131_v10 = vrot.slane %v1129_v9, 5  ;;  %v1463_v25 = vor.u32 %v2959_v36, %v2951_v12 }
 0x1c0   : > { %1190 = vst.msk [vmem:[#allocation3 + $0x10] sm:$0xf] %vm614_vm1, %v1096_v0  ;;  %v1140_v34 = vshrl.u32 %v1063_v46, 16  ;;  %v1143_v16 = vshll.u32 %v1063_v46, 16  ;;  %v1450_v58 = vrot.slane %v1449_v51, 4  ;;  %v1175_v19 = vrot.slane %v1174_v11, 4  ;;  %881 = vrot.lane.b32.xlu1 %v842_v50, %s2514_s10 }
 0x1c1   : > { %v1137_v20 = vrot.slane %v1135_v14, 5  ;;  %v1149_v22 = vshll.u32 %v1064_v57, 16  ;;  %v1357_v1 = vld [vmem:[#allocation2 + $0x4c] sm:$0x1]  ;;  %v1166_v26 = vsel %vm2766_vm8, %v1161_v53, %v1165_v54  ;;  %v1132_v24 = vor.u32 %v1131_v10, %v1128_v13  ;;  %v1301_v18 = vld [vmem:[#allocation2 + $0x48] sm:$0xf] }
 0x1c2   : > { %v1142_v5 = vrot.slane %v1140_v34, 4  ;;  %v1145_v23 = vrot.slane %v1143_v16, 5  ;;  %1195 = vst.msk [vmem:[#allocation3 + $0x4c] sm:$0xf] %vm614_vm1, %v1166_v26  ;;  %v1180_v29 = vsel %vm2766_vm8, %v1175_v19, %v1179_v8  ;;  %v1466_v47 = vshll.u32 %v1357_v1, 16  ;;  %s2433_s10 = scalar_lea.vmem %s3247_s29, 1024 }
 0x1c3   : > { %1196 = vst.msk [vmem:[#allocation3 + $0x58] sm:$0xf] %vm614_vm1, %v1180_v29  ;;  %v1133_v30 = vrot.slane %v1132_v24, 4  ;;  %v1151_v27 = vrot.slane %v1149_v22, 5  ;;  %v1455_v28 = vsel %vm2766_vm8, %v1450_v58, %v3084_v2  ;;  %v1464_v21 = vrot.slane %v1463_v25, 4  ;;  %p2434_p11 = scmp.ne.s32.totalorder %s3247_s29, %s2433_s10  ;;  %p2441_p9 = scmp.lt.s32.totalorder %s2439_s19, %s2433_s10 }
 0x1c4   : > { %v1146_v51 = vor.u32 %v1145_v23, %v1142_v5  ;;  %1482 = vrot.lane.b32.xlu0 %v1455_v28, %s2515_s18  ;;  %1324 = vrot.lane.b32.xlu1 %v1301_v18, %s2513_s30  ;;  %v1468_v12 = vrot.slane %v1466_v47, 5  ;;  %v1011_v36 = vld [vmem:[#allocation2 + $0x40] sm:$0xf]  ;;  %s1954_s30 = scalar_lea.sflag [#allocation6], %s2731_s23 }
 0x1c5   : > { %v1138_v35 = vsel %vm2766_vm8, %v1133_v30, %v1137_v20  ;;  %p2435_p1 = pnand %p2434_p11, %p3329_p0  ;;  %p2442_p12 = por %p2441_p9, %p2440_p7 }
 0x1c6   : > { %v1147_v15 = vrot.slane %v1146_v51, 4  ;;  %1193 = vst.msk [vmem:[#allocation3 + $0x34] sm:$0xf] %vm614_vm1, %v1138_v35  ;;  %v1469_v2 = vsel %vm2766_vm8, %v1464_v21, %v1468_v12 }
 0x1c7   : > { %p2436_p3 = pneg %p2435_p1 }
 0x1c8   : > { %v1152_v4 = vsel %vm2766_vm8, %v1147_v15, %v1151_v27  ;;  %1034 = vrot.lane.b32.xlu1 %v1011_v36, %s2515_s18 }
 0x1c9   : > { %1194 = vst.msk [vmem:[#allocation3 + $0x40] sm:$0xf] %vm614_vm1, %v1152_v4  ;;  %p2443_p2 = pnand %p2442_p12, %p2436_p3 }
 0x1cc   : > { %1484 = vrot.lane.b32.xlu1 %v1469_v2, %s2515_s18 }
 0x1dc   : > { %v1313_v31 = vpop.permute.xlu1 %1312 }
 0x1dd   : > { %v1025_v32 = vpop.permute.xlu0 %1024 }
 0x1e0   : > { %v1027_v7 = vpop.permute.xlu1 %1026 }
 0x1e1   : > { %v1021_v33 = vpop.permute.xlu0 %1020 }
 0x1e2   : > { %1045 = vst.msk [vmem:[#allocation3] sm:$0xf] %vm1044_vm2, %v1021_v33 }
 0x1e6   : > { %v1315_v17 = vpop.permute.xlu0 %1314 }
 0x1e8   : > { %v1023_v37 = vpop.permute.xlu1 %1022 }
 0x1ea   : > { %v1311_v63 = vpop.permute.xlu0 %1310 }
 0x1ec   : > { %v978_v38 = vpop.permute.xlu1 %977 }
 0x1ee   : > { %v1266_v39 = vpop.permute.xlu0 %1265 }
 0x1ef   : > { %1287 = vst.msk [vmem:[#allocation3 + $0x1c] sm:$0xf] %vm895_vm11, %v1266_v39 }
 0x1f0   : > { %1336 = vst.msk [vmem:[#allocation3 + $0x1c] sm:$0xf] %vm995_vm14, %v1315_v17 }
 0x1f2   : > { %v1262_v40 = vpop.permute.xlu1 %1261 }
 0x1f3   : > { %1285 = vst.msk [vmem:[#allocation3 + $0x4] sm:$0xf] %vm895_vm11, %v1262_v40  ;;  %v980_v56 = vpop.permute.xlu0 %979 }
 0x1f4   : > { %1334 = vst.msk [vmem:[#allocation3 + $0x4] sm:$0xf] %vm995_vm14, %v1311_v63 }
 0x1f6   : > { %v974_v41 = vpop.permute.xlu1 %973 }
 0x1f7   : > { %v976_v44 = vpop.permute.xlu0 %975 }
 0x1fa   : > { %v1268_v45 = vpop.permute.xlu1 %1267 }
 0x1fb   : > { %1288 = vst.msk [vmem:[#allocation3 + $0x28] sm:$0xf] %vm895_vm11, %v1268_v45  ;;  %v1029_v46 = vpop.permute.xlu0 %1028 }
 0x1fe   : > { %v1264_v48 = vpop.permute.xlu1 %1263 }
 0x1ff   : > { %1286 = vst.msk [vmem:[#allocation3 + $0x10] sm:$0xf] %vm895_vm11, %v1264_v48 }
 0x200   : > { %1335 = vst.msk [vmem:[#allocation3 + $0x10] sm:$0xf] %vm995_vm14, %v1313_v31  ;;  %v874_v49 = vpop.permute.xlu0 %873 }
 0x201   : > { %897 = vst.msk [vmem:[#allocation3 + $0xc] sm:$0xf] %vm895_vm11, %v874_v49 }
 0x202   : > { %v1321_v54 = vpop.permute.xlu1 %1320  ;;  %997 = vst.msk [vmem:[#allocation3 + $0xc] sm:$0xf] %vm995_vm14, %v974_v41 }
 0x203   : > { %1046 = vst.msk [vmem:[#allocation3 + $0xc] sm:$0xf] %vm1044_vm2, %v1023_v37 }
 0x204   : > { %v1323_v55 = vpop.permute.xlu0 %1322 }
 0x206   : > { %v1473_v57 = vpop.permute.xlu1 %1472 }
 0x207   : > { %1495 = vst.msk [vmem:[#allocation3 + $0x10] sm:$0xf] %vm1044_vm2, %v1473_v57 }
 0x208   : > { %v1475_v42 = vpop.permute.xlu0 %1474 }
 0x209   : > { %1496 = vst.msk [vmem:[#allocation3 + $0x1c] sm:$0xf] %vm1044_vm2, %v1475_v42 }
 0x20a   : > { %v878_v60 = vpop.permute.xlu1 %877  ;;  %v2335_v13 = vld [vmem:[#allocation3] ss:$12 sps:$4 sm:$0xff]  }
 0x20b   : > { %899 = vst.msk [vmem:[#allocation3 + $0x24] sm:$0xf] %vm895_vm11, %v878_v60 }
 0x20c   : > { %999 = vst.msk [vmem:[#allocation3 + $0x24] sm:$0xf] %vm995_vm14, %v978_v38  ;;  %v880_v43 = vpop.permute.xlu0 %879 }
 0x20d   : > { %1048 = vst.msk [vmem:[#allocation3 + $0x24] sm:$0xf] %vm1044_vm2, %v1027_v7 }
 0x20e   : > { %v1317_v61 = vpop.permute.xlu1 %1316  ;;  %900 = vst.msk [vmem:[#allocation3 + $0x30] sm:$0xf] %vm895_vm11, %v880_v43 }
 0x20f   : > { %1337 = vst.msk [vmem:[#allocation3 + $0x28] sm:$0xf] %vm995_vm14, %v1317_v61  ;;  %1000 = vst.msk [vmem:[#allocation3 + $0x30] sm:$0xf] %vm995_vm14, %v980_v56 }
 0x210   : > { %1049 = vst.msk [vmem:[#allocation3 + $0x30] sm:$0xf] %vm1044_vm2, %v1029_v46  ;;  %v1319_v62 = vpop.permute.xlu0 %1318 }
 0x212   : > { %v1031_v3 = vpop.permute.xlu1 %1030 }
 0x214   : > { %v1274_v6 = vpop.permute.xlu0 %1273 }
 0x215   : > { %1291 = vst.msk [vmem:[#allocation3 + $0x4c] sm:$0xf] %vm895_vm11, %v1274_v6 }
 0x216   : > { %v986_v8 = vpop.permute.xlu1 %985  ;;  %1340 = vst.msk [vmem:[#allocation3 + $0x4c] sm:$0xf] %vm995_vm14, %v1323_v55 }
 0x218   : > { %v1471_v9 = vpop.permute.xlu0 %1470 }
 0x219   : > { %1494 = vst.msk [vmem:[#allocation3 + $0x4] sm:$0xf] %vm1044_vm2, %v1471_v9 }
 0x21a   : > { %v982_v52 = vpop.permute.xlu1 %981 }
 0x21c   : > { %v876_v59 = vpop.permute.xlu0 %875 }
 0x21d   : > { %898 = vst.msk [vmem:[#allocation3 + $0x18] sm:$0xf] %vm895_vm11, %v876_v59 }
 0x21e   : > { %v1276_v0 = vpop.permute.xlu1 %1275  ;;  %998 = vst.msk [vmem:[#allocation3 + $0x18] sm:$0xf] %vm995_vm14, %v976_v44 }
 0x21f   : > { %1292 = vst.msk [vmem:[#allocation3 + $0x58] sm:$0xf] %vm895_vm11, %v1276_v0 }
 0x220   : > { %1047 = vst.msk [vmem:[#allocation3 + $0x18] sm:$0xf] %vm1044_vm2, %v1025_v32  ;;  %v1270_v11 = vpop.permute.xlu0 %1269  ;;  %v2337_v14 = vld [vmem:[#allocation3 + $0x4] ss:$12 sps:$4 sm:$0xff]  }
 0x221   : > { %1289 = vst.msk [vmem:[#allocation3 + $0x34] sm:$0xf] %vm895_vm11, %v1270_v11  ;;  %1847 = vmatprep.mubr.bf16.mxu1 %v2337_v14 }
 0x222   : > { %v1272_v53 = vpop.permute.xlu1 %1271  ;;  %1338 = vst.msk [vmem:[#allocation3 + $0x34] sm:$0xf] %vm995_vm14, %v1319_v62  ;;  %1848 = vmatmul.mubr.bf16.vlgmr.msra.gmra.mrb[0].mxu1 %v2335_v13 }
 0x223   : > { %1290 = vst.msk [vmem:[#allocation3 + $0x40] sm:$0xf] %vm895_vm11, %v1272_v53 }
 0x224   : > { %1339 = vst.msk [vmem:[#allocation3 + $0x40] sm:$0xf] %vm995_vm14, %v1321_v54  ;;  %v984_v10 = vpop.permute.xlu0 %983 }
 0x226   : > { %v1481_v34 = vpop.permute.xlu1 %1480 }
 0x227   : > { %1499 = vst.msk [vmem:[#allocation3 + $0x40] sm:$0xf] %vm1044_vm2, %v1481_v34  ;;  %v2340_v23 = vld [vmem:[#allocation3 + $0x18] ss:$12 sps:$4 sm:$0xff]  }
 0x228   : > { %v1033_v16 = vpop.permute.xlu0 %1032 }
 0x22a   : > { %v886_v58 = vpop.permute.xlu1 %885 }
 0x22b   : > { %903 = vst.msk [vmem:[#allocation3 + $0x54] sm:$0xf] %vm895_vm11, %v886_v58 }
 0x22c   : > { %1003 = vst.msk [vmem:[#allocation3 + $0x54] sm:$0xf] %vm995_vm14, %v986_v8  ;;  %v1479_v19 = vpop.permute.xlu0 %1478 }
 0x22d   : > { %1498 = vst.msk [vmem:[#allocation3 + $0x34] sm:$0xf] %vm1044_vm2, %v1479_v19 }
 0x22e   : > { %v1477_v20 = vpop.permute.xlu1 %1476 }
 0x22f   : > { %1497 = vst.msk [vmem:[#allocation3 + $0x28] sm:$0xf] %vm1044_vm2, %v1477_v20 }
 0x230   : > { %v884_v22 = vpop.permute.xlu0 %883 }
 0x231   : > { %902 = vst.msk [vmem:[#allocation3 + $0x48] sm:$0xf] %vm895_vm11, %v884_v22 }
 0x232   : > { %v882_v1 = vpop.permute.xlu1 %881  ;;  %1002 = vst.msk [vmem:[#allocation3 + $0x48] sm:$0xf] %vm995_vm14, %v984_v10 }
 0x233   : > { %901 = vst.msk [vmem:[#allocation3 + $0x3c] sm:$0xf] %vm895_vm11, %v882_v1 }
 0x234   : > { %1001 = vst.msk [vmem:[#allocation3 + $0x3c] sm:$0xf] %vm995_vm14, %v982_v52  ;;  %v2341_v29 = vld [vmem:[#allocation3 + $0x34] ss:$12 sps:$4 sm:$0xff]  }
 0x235   : > { %1051 = vst.msk [vmem:[#allocation3 + $0x48] sm:$0xf] %vm1044_vm2, %v1033_v16  ;;  %1050 = vst.msk [vmem:[#allocation3 + $0x3c] sm:$0xf] %vm1044_vm2, %v1031_v3 }
 0x236   : > { %v1483_v26 = vpop.permute.xlu0 %1482  ;;  %v1325_v24 = vpop.permute.xlu1 %1324  ;;  %v2338_v5 = vld [vmem:[#allocation3 + $0x1c] ss:$12 sps:$4 sm:$0xff]  }
 0x237   : > { %1500 = vst.msk [vmem:[#allocation3 + $0x4c] sm:$0xf] %vm1044_vm2, %v1483_v26  ;;  %1855 = vmatprep.mubr.bf16.mxu1 %v2338_v5 }
 0x238   : > { %1341 = vst.msk [vmem:[#allocation3 + $0x58] sm:$0xf] %vm995_vm14, %v1325_v24  ;;  %1856 = vmatmul.mubr.bf16.gmra.mrb[4].mxu1 %v2340_v23 }
 0x239   : > { %1863 = vmatprep.mubr.bf16.mxu1 %v2341_v29 }
 0x23a   : > { %v1035_v50 = vpop.permute.xlu1 %1034 }
 0x23b   : > { %1052 = vst.msk [vmem:[#allocation3 + $0x54] sm:$0xf] %vm1044_vm2, %v1035_v50 }
 0x23c   : > { %v2343_v51 = vld [vmem:[#allocation3 + $0x30] ss:$12 sps:$4 sm:$0xff]  }
 0x23e   : > { %v1485_v30 = vpop.permute.xlu1 %1484 }
 0x23f   : > { %1501 = vst.msk [vmem:[#allocation3 + $0x58] sm:$0xf] %vm1044_vm2, %v1485_v30 }
 0x240   : > { %1864 = vmatmul.mubr.bf16.gmra.mrb[8].mxu1 %v2343_v51 }
 0x242   : > { %v2346_v18 = vld [vmem:[#allocation3 + $0x48] ss:$12 sps:$4 sm:$0xff]  }
 0x246   : > { %v2344_v27 = vld [vmem:[#allocation3 + $0x4c] ss:$12 sps:$4 sm:$0xff]  }
 0x247   : > { %1871 = vmatprep.mubr.bf16.mxu1 %v2344_v27 }
 0x248   : > { %1872 = vmatmul.mubr.bf16.gmra.mrb[12].mxu1 %v2346_v18 }
 0x259   : > { %v2229_v25 = vpop.f32.mrb[8].mxu0 }
 0x25a   : > { %v1914_v47 = vpop.f32.mrb[9].mxu0 }
 0x25b   : > { %v2230_v28 = vpop.f32.mrb[10].mxu0 }
 0x25c   : > { %v1917_v35 = vpop.f32.mrb[11].mxu0 }
 0x265   : > { %v2233_v15 = vpop.f32.mrb[12].mxu0 }
 0x266   : > { %v1930_v4 = vpop.f32.mrb[13].mxu0 }
 0x267   : > { %v2234_v21 = vpop.f32.mrb[14].mxu0 }
 0x268   : > { %v1933_v12 = vpop.f32.mrb[15].mxu0 }
 0x2f5   : > { %v2183_v36 = vpop.f32.mrb[0].mxu1 }
 0x2f6   : > { %v2184_v2 = vpop.f32.mrb[1].mxu1 }
 0x2f7   : > { %v2185_v31 = vadd.f32 %v2184_v2, %v2183_v36  ;;  %v2186_v32 = vpop.f32.mrb[2].mxu1 }
 0x2f8   : > { %v2187_v33 = vpop.f32.mrb[3].mxu1 }
 0x2f9   : > { %v1915_v7 = vadd.f32 %v2185_v31, %v1914_v47  ;;  %v2188_v17 = vadd.f32 %v2187_v33, %v2186_v32 }
 0x2fb   : > { %1945 = vst [vmem:[%s3237_s21] sm:$0xff] %v1915_v7  ;;  %v1918_v37 = vadd.f32 %v2188_v17, %v1917_v35 }
 0x2fd   : > { %1946 = vst [vmem:[%s3237_s21 + $0x8] sm:$0xff] %v1918_v37 }
 0x30b   : > { %v2189_v63 = vpop.f32.mrb[4].mxu1 }
 0x30c   : > { %v2190_v38 = vpop.f32.mrb[5].mxu1 }
 0x30d   : > { %v2191_v39 = vadd.f32 %v2190_v38, %v2189_v63  ;;  %v2192_v40 = vpop.f32.mrb[6].mxu1 }
 0x30e   : > { %v2193_v56 = vpop.f32.mrb[7].mxu1 }
 0x30f   : > { %v1923_v41 = vadd.f32 %v2229_v25, %v2191_v39  ;;  %v2194_v44 = vadd.f32 %v2193_v56, %v2192_v40 }
 0x311   : > { %1947 = vst [vmem:[%s3237_s21 + $0x10] sm:$0xff] %v1923_v41  ;;  %v1926_v45 = vadd.f32 %v2230_v28, %v2194_v44 }
 0x313   : > { %1948 = vst [vmem:[%s3237_s21 + $0x18] sm:$0xff] %v1926_v45  ;;  %v2195_v46 = vpop.f32.mrb[8].mxu1 }
 0x314   : > { %v2196_v48 = vpop.f32.mrb[9].mxu1 }
 0x315   : > { %v2197_v49 = vadd.f32 %v2196_v48, %v2195_v46  ;;  %v2198_v54 = vpop.f32.mrb[10].mxu1 }
 0x316   : > { %v2199_v55 = vpop.f32.mrb[11].mxu1 }
 0x317   : > { %v1931_v57 = vadd.f32 %v2197_v49, %v1930_v4  ;;  %v2200_v42 = vadd.f32 %v2199_v55, %v2198_v54 }
 0x319   : > { %1949 = vst [vmem:[%s3237_s21 + $0x20] sm:$0xff] %v1931_v57  ;;  %v1934_v60 = vadd.f32 %v2200_v42, %v1933_v12 }
 0x31b   : > { %1950 = vst [vmem:[%s3237_s21 + $0x28] sm:$0xff] %v1934_v60  ;;  %v2201_v43 = vpop.f32.mrb[12].mxu1 }
 0x31c   : > { %v2202_v61 = vpop.f32.mrb[13].mxu1 }
 0x31d   : > { %v2203_v62 = vadd.f32 %v2202_v61, %v2201_v43  ;;  %v2204_v3 = vpop.f32.mrb[14].mxu1 }
 0x31e   : > { %v2205_v6 = vpop.f32.mrb[15].mxu1 }
 0x31f   : > { %v1939_v8 = vadd.f32 %v2233_v15, %v2203_v62  ;;  %v2206_v9 = vadd.f32 %v2205_v6, %v2204_v3 }
 0x321   : > { %1951 = vst [vmem:[%s3237_s21 + $0x30] sm:$0xff] %v1939_v8  ;;  %v1942_v52 = vadd.f32 %v2234_v21, %v2206_v9 }
 0x323   : > { %1952 = vst [vmem:[%s3237_s21 + $0x38] sm:$0xff] %v1942_v52 }
 0x324   : > { %2446 = shalt.err (!%p2443_p2)
}
 0x325   : > { %s2447_s12 = scalar_lea.hbm %s3252_s22, 1024  ;;  %s2451_s21 = scalar_lea.hbm %s3305_s7, 2048 }
 0x326   : > { %p2448_p13 = scmp.ne.s32.totalorder %s3252_s22, %s2447_s12  ;;  %p2452_p4 = scmp.lt.u32.totalorder %s3252_s22, %s3305_s7 }
 0x327   : > { %p2453_p5 = scmp.lt.u32.totalorder %s2451_s21, %s2447_s12  ;;  %p2455_p11 = scmp.lt.u32.totalorder %s2447_s12, %s3252_s22 }
 0x328   : > { %p2449_p6 = pnand %p2448_p13, %p3329_p0 }
 0x329   : > { %p2454_p8 = por %p2453_p5, %p2452_p4 }
 0x32a   : > { %p2450_p10 = pneg %p2449_p6 }
 0x32b   : > { %p2456_p1 = por %p2455_p11, %p2454_p8 }
 0x32d   : > { %p2457_p3 = pnand %p2456_p1, %p2450_p10 }
 0x32f   : > { %2460 = shalt.err (!%p2457_p3)
}
 0x330   : > { %s2517_s11 = smov 128   ;;  %s2518_s10 = smov 8  }
 0x331   : > { %2245 = dma.vmem_to_hbm [thread:$0]  (%p3329_p0), %s3247_s29, 1024, %s3252_s22, %s1954_s30, %s2517_s11, %s2517_s11, %s2518_s10  }
 0x332 PF: > { %s1982_s28 = sand.u32 1, %s2491_s24   ;;  %p3330_p7 = scmp.ne.s32.totalorder %s3310_s8, 0 }
 0x333   : > { %p3331_p9 = scmp.ge.s32.totalorder %s2503_s27, 2  ;;  %s1983_s15 = scalar_lea.sflag [#allocation6], %s1982_s28 }
 0x335   : > { %p2259_p12 = pnand %p3331_p9, %p3330_p7 }
 0x337   : > { %2486 = dma.done.wait (!%p2259_p12), %s1983_s15, 1024  }
 0x338   : > { %2488 = vsyncadd (!%p2259_p12), %s1983_s15, 4294966272  ;;  %p21_p2 = scmp.ge.s32.totalorder %s2669_s13, 4   ;;  %s3332_s24 = smov %s2495_s25 }
 0x339   : > { %s3333_s25 = smov %s2499_s26  ;;  %s3334_s26 = smov %s2685_s17 }
 0x33a   : > { %s3335_s27 = smov %s2669_s13  ;;  %23 = sbr.rel (!%p21_p2) target bundleno = 6 (0x6), region = 104 }
 0x341   :  { %1988 = vsyncpa [#allocation5], 1 }
 0x342   :  { %1990 = vsyncpa [#allocation5 + $0x1], 1 }
 0x343   :  { %1991 = vsyncpa [#allocation8], 1 }
 0x344   :  { %1992 = vsyncpa [#allocation6], 1 }
 0x345   :  { %1994 = vsyncpa [#allocation6 + $0x1], 1 }

</bundles_post_ra>
